<compile_context>
chip_gen: v7x
topology: tpu7x:2x2x1
jax: 0.10.0
libtpu: 0.0.40
codegen_flags: <defaults>
</compile_context>

<pallas_src>
import functools

import jax
import jax.numpy as jnp
from jax.experimental import pallas as pl
from jax.experimental.pallas import tpu as pltpu


_VMEM = pl.BlockSpec(memory_space=pltpu.MemorySpace.VMEM)


def _round8(n):
    return ((n + 7) // 8) * 8


def _w_row_layout(Ds, Dt, Dm, H1, H2, Hh, n_heads):
    """Row offsets of each weight block inside the packed weight slab."""
    sizes = [Ds, Dt, 3 * Dt, H1, H1 + H2, Dm + H2, n_heads * Hh]
    offs, off = [], 0
    for s in sizes:
        offs.append(off)
        off += _round8(s)
    return offs, off


# ----------------------------------------------------------------------------
# Single fused kernel (built per static shape configuration)
# ----------------------------------------------------------------------------
def make_kernel(B, T, Ds, Dt, Dm, H1, H2, Hh, n_heads, total_nc):
    offs, _ = _w_row_layout(Ds, Dt, Dm, H1, H2, Hh, n_heads)
    ro_mlp, ro_attn, ro_pre, ro_wh, ro_rec, ro_w1, ro_w2 = offs
    HE = n_heads * Hh
    f32 = jnp.float32
    bf16 = jnp.bfloat16

    def kernel(s_ref, tp_ref, w_ref, b_ref, out_ref):
        # ---------------- read-once parameter unpack ----------------
        mlp_w = w_ref[ro_mlp:ro_mlp + Ds, :Dm].astype(bf16)
        attn_w = w_ref[ro_attn:ro_attn + Dt, :Dt].astype(bf16)
        pre_w = w_ref[ro_pre:ro_pre + 3 * Dt, :4 * H1].astype(bf16)
        wh = w_ref[ro_wh:ro_wh + H1, :3 * H1]
        wh_zr = wh[:, :2 * H1].astype(bf16)           # z / r columns
        wh_n = wh[:, 2 * H1:].astype(bf16)            # candidate columns
        rec_w = w_ref[ro_rec:ro_rec + H1 + H2, :6 * H2].astype(bf16)
        w1 = w_ref[ro_w1:ro_w1 + Dm + H2, :HE]
        w1_s = w1[:Dm, :].astype(bf16)
        w1_h = w1[Dm:, :].astype(bf16)
        w2 = w_ref[ro_w2:ro_w2 + HE, :total_nc].astype(bf16)

        mlp_b = b_ref[0:1, :Dm]
        attn_b = b_ref[1:2, :Dt]
        gx_w = b_ref[2:3, :Dt]
        gx_b = b_ref[3:4, :Dt]
        pre_b = b_ref[4:5, :4 * H1]
        rec_b = b_ref[5:6, :6 * H2]
        head_b1 = b_ref[6:7, :HE]
        head_b2 = b_ref[7:8, :total_nc]

        x = s_ref[:, :Ds]
        mean = s_ref[:, Ds:Ds + Dt]

        vals = tp_ref[:, 0 * Dt:1 * Dt]
        m = tp_ref[:, 1 * Dt:2 * Dt]
        d = tp_ref[:, 2 * Dt:3 * Dt]
        locf = tp_ref[:, 3 * Dt:4 * Dt]

        # ------- batched precompute over all T*B rows (input-only work) ------
        # pre-spatial attention: softmax(Linear(values)) * values
        scores = (jnp.dot(vals.astype(bf16), attn_w, preferred_element_type=f32)
                  + attn_b)
        scores = scores - jnp.max(scores, axis=-1, keepdims=True)
        e = jnp.exp(scores)
        attn = e / jnp.sum(e, axis=-1, keepdims=True)
        xa = attn * vals

        # GRU-D input decay + imputation (mean broadcast over time in vregs)
        mean_tb = jnp.tile(mean, (T, 1))
        gamma_x = jnp.exp(-jnp.maximum(d * gx_w + gx_b, 0.0))
        x_hat = m * xa + (1.0 - m) * (gamma_x * locf + (1.0 - gamma_x) * mean_tb)

        # one fused matmul: [x_hat | m | d] @ [[wx, 0], [wm, 0], [0, gh_w]]
        cat_in = jnp.concatenate([x_hat, m, d], axis=1).astype(bf16)
        pre = jnp.dot(cat_in, pre_w, preferred_element_type=f32) + pre_b
        gxm_all = pre[:, :3 * H1]                              # gate preacts
        gam_all = jnp.exp(-jnp.maximum(pre[:, 3 * H1:], 0.0))  # hidden decay

        # ---------------- serial recurrence, fully unrolled ----------------
        h1 = jnp.zeros((B, H1), f32)
        h2 = jnp.zeros((B, H2), f32)
        for t in range(T):
            r0 = t * B
            gxm_t = gxm_all[r0:r0 + B, :]
            gam_t = gam_all[r0:r0 + B, :]

            # GRU-D cell (layer 1): gate order (z, r, n), reset before matmul
            h_prev = gam_t * h1
            ghh = jnp.dot(h_prev.astype(bf16), wh_zr,
                          preferred_element_type=f32)
            z = jax.nn.sigmoid(gxm_t[:, :H1] + ghh[:, :H1])
            r = jax.nn.sigmoid(gxm_t[:, H1:2 * H1] + ghh[:, H1:])
            cand = jnp.dot((r * h_prev).astype(bf16), wh_n,
                           preferred_element_type=f32)
            h_tilde = jnp.tanh(gxm_t[:, 2 * H1:] + cand)
            h1 = (1.0 - z) * h_prev + z * h_tilde

            # GRU cell (layer 2, torch order r, z, n): one block-diag matmul
            h12 = jnp.concatenate([h1, h2], axis=1).astype(bf16)
            g = jnp.dot(h12, rec_w, preferred_element_type=f32) + rec_b
            gi, gh = g[:, :3 * H2], g[:, 3 * H2:]
            r2 = jax.nn.sigmoid(gi[:, :H2] + gh[:, :H2])
            z2 = jax.nn.sigmoid(gi[:, H2:2 * H2] + gh[:, H2:2 * H2])
            n2 = jnp.tanh(gi[:, 2 * H2:] + r2 * gh[:, 2 * H2:])
            h2 = (1.0 - z2) * n2 + z2 * h2

        # ---------------- static encoder + fused MTL heads ----------------
        static_out = jnp.maximum(
            jnp.dot(x.astype(bf16), mlp_w, preferred_element_type=f32) + mlp_b,
            0.0)
        # embedding = concat([static_out, h2]); avoided by splitting w1 rows.
        emb = jnp.maximum(
            jnp.dot(static_out.astype(bf16), w1_s, preferred_element_type=f32)
            + jnp.dot(h2.astype(bf16), w1_h, preferred_element_type=f32)
            + head_b1, 0.0)
        logits = (jnp.dot(emb.astype(bf16), w2, preferred_element_type=f32)
                  + head_b2)

        out_ref[...] = jnp.concatenate([emb, logits], axis=1)

    return kernel


# ----------------------------------------------------------------------------
# Parameter init (deterministic, synthetic) — mirrors the torch module layout
# ----------------------------------------------------------------------------
def init_params(key, Ds, Dt, Dm, H1, H2, Hh, head_classes):
    ks = iter(jax.random.split(key, 64))
    rnd = lambda shape: 0.1 * jax.random.normal(next(ks), shape, jnp.float32)

    p = {}
    # static encoder MLP
    p["mlp_w"] = rnd((Ds, Dm))
    p["mlp_b"] = rnd((1, Dm))
    # pre-spatial attention
    p["attn_w"] = rnd((Dt, Dt))
    p["attn_b"] = rnd((1, Dt))
    # GRU-D
    p["gx_w"] = rnd((1, Dt))
    p["gx_b"] = rnd((1, Dt))
    p["gh_w"] = rnd((Dt, H1))
    p["gh_b"] = rnd((1, H1))
    p["wx"] = rnd((Dt, 3 * H1))
    p["wh"] = rnd((H1, 3 * H1))
    p["wm"] = rnd((Dt, 3 * H1))
    p["wb"] = rnd((1, 3 * H1))
    # layer-2 GRU (torch gate order r, z, n)
    p["gw_ih"] = rnd((H1, 3 * H2))
    p["gw_hh"] = rnd((H2, 3 * H2))
    p["gb_ih"] = rnd((1, 3 * H2))
    p["gb_hh"] = rnd((1, 3 * H2))

    # MTL heads (per-head, mirrors the torch module) then packed
    out_dim = Dm + H2
    heads = [
        dict(w1=rnd((out_dim, Hh)), b1=rnd((1, Hh)),
             w2=rnd((Hh, nc)), b2=rnd((1, nc)))
        for nc in head_classes
    ]
    n_heads = len(heads)
    total_nc = sum(head_classes)
    p["head_w1"] = jnp.concatenate([h["w1"] for h in heads], axis=1)
    p["head_b1"] = jnp.concatenate([h["b1"] for h in heads], axis=1)
    w2_bd = jnp.zeros((n_heads * Hh, total_nc), jnp.float32)
    off = 0
    for i, (h, nc) in enumerate(zip(heads, head_classes)):
        w2_bd = w2_bd.at[i * Hh:(i + 1) * Hh, off:off + nc].set(h["w2"])
        off += nc
    p["head_w2"] = w2_bd
    p["head_b2"] = jnp.concatenate([h["b2"] for h in heads], axis=1)
    return p


# ----------------------------------------------------------------------------
# Pack all weights/biases into two contiguous VMEM slabs (done once)
# ----------------------------------------------------------------------------
def pack_params(p, Ds, Dt, Dm, H1, H2, Hh, head_classes):
    n_heads = len(head_classes)
    total_nc = sum(head_classes)
    HE = n_heads * Hh
    LW = max(Dm, Dt, 4 * H1, 3 * H1, 6 * H2, HE, total_nc)

    # fused pre-loop weight: [x_hat | m | d] @ [[wx, 0], [wm, 0], [0, gh_w]]
    pre_w = jnp.zeros((3 * Dt, 4 * H1), jnp.float32)
    pre_w = pre_w.at[:Dt, :3 * H1].set(p["wx"])
    pre_w = pre_w.at[Dt:2 * Dt, :3 * H1].set(p["wm"])
    pre_w = pre_w.at[2 * Dt:, 3 * H1:].set(p["gh_w"])

    # layer-2 block-diagonal weight: [h1 | h2] @ blockdiag(gw_ih, gw_hh)
    rec_w = jnp.zeros((H1 + H2, 6 * H2), jnp.float32)
    rec_w = rec_w.at[:H1, :3 * H2].set(p["gw_ih"])
    rec_w = rec_w.at[H1:, 3 * H2:].set(p["gw_hh"])

    mats = [p["mlp_w"], p["attn_w"], pre_w, p["wh"], rec_w,
            p["head_w1"], p["head_w2"]]
    offs, total_rows = _w_row_layout(Ds, Dt, Dm, H1, H2, Hh, n_heads)
    wpack = jnp.zeros((total_rows, LW), jnp.float32)
    for off, mat in zip(offs, mats):
        r, c = mat.shape
        wpack = wpack.at[off:off + r, :c].set(mat)

    pre_b = jnp.concatenate([p["wb"], p["gh_b"]], axis=1)        # (1, 4*H1)
    rec_b = jnp.concatenate([p["gb_ih"], p["gb_hh"]], axis=1)    # (1, 6*H2)
    vecs = [p["mlp_b"], p["attn_b"], p["gx_w"], p["gx_b"],
            pre_b, rec_b, p["head_b1"], p["head_b2"]]
    bpack = jnp.zeros((len(vecs), LW), jnp.float32)
    for i, v in enumerate(vecs):
        bpack = bpack.at[i:i + 1, :v.shape[1]].set(v)
    return wpack, bpack


# ----------------------------------------------------------------------------
# Full forward pass (single pallas_call + trivial wrapper pack/slice)
# ----------------------------------------------------------------------------
@functools.partial(jax.jit,
                   static_argnames=("Dm", "H1", "H2", "Hh", "head_classes"))
def forward(inputs, wpack, bpack, *, Dm, H1, H2, Hh, head_classes):
    x = inputs["X"]
    values = inputs["X_t"]
    masks = inputs["X_t_mask"]
    deltas = inputs["deltaT_t"]
    emp_mean = inputs["empirical_mean"]
    locf = inputs["X_t_filledLOCF"]

    B, T, Dt = values.shape
    Ds = x.shape[1]
    n_heads = len(head_classes)
    total_nc = sum(head_classes)
    HE = n_heads * Hh

    # layout plumbing only: pack temporal tensors, time-major flatten.
    tp = jnp.concatenate([values, masks, deltas, locf], axis=-1)   # (B,T,4Dt)
    tp = jnp.transpose(tp, (1, 0, 2)).reshape(T * B, 4 * Dt)
    sp = jnp.concatenate([x, emp_mean], axis=-1)                   # (B,Ds+Dt)

    kernel = make_kernel(B, T, Ds, Dt, Dm, H1, H2, Hh, n_heads, total_nc)
    out = pl.pallas_call(
        kernel,
        out_shape=jax.ShapeDtypeStruct((B, HE + total_nc), jnp.float32),
        in_specs=[_VMEM] * 4,
        out_specs=_VMEM,
    )(sp, tp, wpack, bpack)

    head_embeddings = out[:, :HE].reshape(B, n_heads, Hh)
    logits_all = out[:, HE:]
    head_logits = []
    off = 0
    for nc in head_classes:
        head_logits.append(logits_all[:, off:off + nc])
        off += nc
    return head_logits, head_embeddings


# ----------------------------------------------------------------------------
if __name__ == "__main__":
    B = 2        # batch
    T = 8        # n_steps
    Dt = 6       # n_t_features (temporal)
    Ds = 10      # n_features (static)
    Dm = 16      # static encoder out_features
    H1 = 16      # rnn_hidden_size_1 (GRU-D)
    H2 = 16      # rnn_hidden_size_2 (GRU)
    Hh = 32      # head hidden_dim (same for all heads so embeddings stack)
    head_classes = (3, 4, 5, 2, 6)   # n_classes[0], [1], [2], [6], [7]

    key = jax.random.PRNGKey(0)
    k_in, k_p = jax.random.split(key)
    kx, kv, km, kd, ke = jax.random.split(k_in, 5)

    X_t = jax.random.normal(kv, (B, T, Dt), jnp.float32)
    mask = (jax.random.uniform(km, (B, T, Dt)) > 0.3).astype(jnp.float32)
    # TODO(synk): demo LOCF fill is X_t * mask, not a true last-observation fill
    inputs = {
        "X": jax.random.normal(kx, (B, Ds), jnp.float32),
        "X_t": X_t,
        "X_t_mask": mask,
        "deltaT_t": jnp.abs(jax.random.normal(kd, (B, T, Dt), jnp.float32)),
        "empirical_mean": jnp.broadcast_to(
            jax.random.normal(ke, (1, Dt), jnp.float32), (B, Dt)),
        "X_t_filledLOCF": X_t * mask,
    }

    params = init_params(k_p, Ds, Dt, Dm, H1, H2, Hh, head_classes)
    wpack, bpack = pack_params(params, Ds, Dt, Dm, H1, H2, Hh, head_classes)

    head_logits, head_embeddings = forward(
        inputs, wpack, bpack,
        Dm=Dm, H1=H1, H2=H2, Hh=Hh, head_classes=head_classes)
    jax.block_until_ready(head_embeddings)
    for i, hl in enumerate(head_logits):
        jax.block_until_ready(hl)
        assert hl.shape == (B, head_classes[i])
    assert head_embeddings.shape == (B, len(head_classes), Hh)
    assert bool(jnp.all(jnp.isfinite(head_embeddings)))
    print("KERNEL_OK")
</pallas_src>

<mosaic_0001>
module attributes {stable_mosaic.version = 11 : i64} {
  func.func @kernel(%arg0: memref<2x16xf32, #tpu.memory_space<vmem>>, %arg1: memref<16x24xf32, #tpu.memory_space<vmem>>, %arg2: memref<288x160xf32, #tpu.memory_space<vmem>>, %arg3: memref<8x160xf32, #tpu.memory_space<vmem>>, %arg4: memref<2x180xf32, #tpu.memory_space<vmem>>) attributes {dimension_semantics = [], scalar_prefetch = 0 : i64, scratch_operands = 0 : i64, tpu.core_type = #tpu.core_type<tc>} {
    %c0 = arith.constant 0 : index
    %c0_0 = arith.constant 0 : index
    %0 = vector.load %arg2[%c0, %c0_0] : memref<288x160xf32, #tpu.memory_space<vmem>>, vector<10x16xf32>
    %1 = arith.truncf %0 : vector<10x16xf32> to vector<10x16xbf16>
    %c16 = arith.constant 16 : index
    %c0_1 = arith.constant 0 : index
    %2 = vector.load %arg2[%c16, %c0_1] : memref<288x160xf32, #tpu.memory_space<vmem>>, vector<6x6xf32>
    %3 = arith.truncf %2 : vector<6x6xf32> to vector<6x6xbf16>
    %c24 = arith.constant 24 : index
    %c0_2 = arith.constant 0 : index
    %4 = vector.load %arg2[%c24, %c0_2] : memref<288x160xf32, #tpu.memory_space<vmem>>, vector<18x64xf32>
    %5 = arith.truncf %4 : vector<18x64xf32> to vector<18x64xbf16>
    %c48 = arith.constant 48 : index
    %c0_3 = arith.constant 0 : index
    %6 = vector.load %arg2[%c48, %c0_3] : memref<288x160xf32, #tpu.memory_space<vmem>>, vector<16x48xf32>
    %7 = vector.extract_strided_slice %6 {offsets = [0, 0], sizes = [16, 32], strides = [1, 1]} : vector<16x48xf32> to vector<16x32xf32>
    %8 = arith.truncf %7 : vector<16x32xf32> to vector<16x32xbf16>
    %9 = vector.extract_strided_slice %6 {offsets = [0, 32], sizes = [16, 16], strides = [1, 1]} : vector<16x48xf32> to vector<16x16xf32>
    %10 = arith.truncf %9 : vector<16x16xf32> to vector<16x16xbf16>
    %c64 = arith.constant 64 : index
    %c0_4 = arith.constant 0 : index
    %11 = vector.load %arg2[%c64, %c0_4] : memref<288x160xf32, #tpu.memory_space<vmem>>, vector<32x96xf32>
    %12 = arith.truncf %11 : vector<32x96xf32> to vector<32x96xbf16>
    %c96 = arith.constant 96 : index
    %c0_5 = arith.constant 0 : index
    %13 = vector.load %arg2[%c96, %c0_5] : memref<288x160xf32, #tpu.memory_space<vmem>>, vector<32x160xf32>
    %14 = vector.extract_strided_slice %13 {offsets = [0, 0], sizes = [16, 160], strides = [1, 1]} : vector<32x160xf32> to vector<16x160xf32>
    %15 = arith.truncf %14 : vector<16x160xf32> to vector<16x160xbf16>
    %16 = vector.extract_strided_slice %13 {offsets = [16, 0], sizes = [16, 160], strides = [1, 1]} : vector<32x160xf32> to vector<16x160xf32>
    %17 = arith.truncf %16 : vector<16x160xf32> to vector<16x160xbf16>
    %c128 = arith.constant 128 : index
    %c0_6 = arith.constant 0 : index
    %18 = vector.load %arg2[%c128, %c0_6] : memref<288x160xf32, #tpu.memory_space<vmem>>, vector<160x20xf32>
    %19 = arith.truncf %18 : vector<160x20xf32> to vector<160x20xbf16>
    %c0_7 = arith.constant 0 : index
    %c0_8 = arith.constant 0 : index
    %20 = vector.load %arg3[%c0_7, %c0_8] : memref<8x160xf32, #tpu.memory_space<vmem>>, vector<1x16xf32>
    %c1 = arith.constant 1 : index
    %c0_9 = arith.constant 0 : index
    %21 = vector.load %arg3[%c1, %c0_9] : memref<8x160xf32, #tpu.memory_space<vmem>>, vector<1x6xf32>
    %c2 = arith.constant 2 : index
    %c0_10 = arith.constant 0 : index
    %22 = vector.load %arg3[%c2, %c0_10] : memref<8x160xf32, #tpu.memory_space<vmem>>, vector<1x6xf32>
    %c3 = arith.constant 3 : index
    %c0_11 = arith.constant 0 : index
    %23 = vector.load %arg3[%c3, %c0_11] : memref<8x160xf32, #tpu.memory_space<vmem>>, vector<1x6xf32>
    %c4 = arith.constant 4 : index
    %c0_12 = arith.constant 0 : index
    %24 = vector.load %arg3[%c4, %c0_12] : memref<8x160xf32, #tpu.memory_space<vmem>>, vector<1x64xf32>
    %c5 = arith.constant 5 : index
    %c0_13 = arith.constant 0 : index
    %25 = vector.load %arg3[%c5, %c0_13] : memref<8x160xf32, #tpu.memory_space<vmem>>, vector<1x96xf32>
    %c6 = arith.constant 6 : index
    %c0_14 = arith.constant 0 : index
    %26 = vector.load %arg3[%c6, %c0_14] : memref<8x160xf32, #tpu.memory_space<vmem>>, vector<1x160xf32>
    %c7 = arith.constant 7 : index
    %c0_15 = arith.constant 0 : index
    %27 = vector.load %arg3[%c7, %c0_15] : memref<8x160xf32, #tpu.memory_space<vmem>>, vector<1x20xf32>
    %c0_16 = arith.constant 0 : index
    %c0_17 = arith.constant 0 : index
    %28 = vector.load %arg0[%c0_16, %c0_17] : memref<2x16xf32, #tpu.memory_space<vmem>>, vector<2x10xf32>
    %c0_18 = arith.constant 0 : index
    %c10 = arith.constant 10 : index
    %29 = vector.load %arg0[%c0_18, %c10] : memref<2x16xf32, #tpu.memory_space<vmem>>, vector<2x6xf32>
    %c0_19 = arith.constant 0 : index
    %c0_20 = arith.constant 0 : index
    %30 = vector.load %arg1[%c0_19, %c0_20] : memref<16x24xf32, #tpu.memory_space<vmem>>, vector<16x6xf32>
    %c0_21 = arith.constant 0 : index
    %c6_22 = arith.constant 6 : index
    %31 = vector.load %arg1[%c0_21, %c6_22] : memref<16x24xf32, #tpu.memory_space<vmem>>, vector<16x6xf32>
    %c0_23 = arith.constant 0 : index
    %c12 = arith.constant 12 : index
    %32 = vector.load %arg1[%c0_23, %c12] : memref<16x24xf32, #tpu.memory_space<vmem>>, vector<16x6xf32>
    %c0_24 = arith.constant 0 : index
    %c18 = arith.constant 18 : index
    %33 = vector.load %arg1[%c0_24, %c18] : memref<16x24xf32, #tpu.memory_space<vmem>>, vector<16x6xf32>
    %34 = arith.truncf %30 : vector<16x6xf32> to vector<16x6xbf16>
    %cst = arith.constant dense<0.000000e+00> : vector<16x6xf32>
    %35 = tpu.matmul %34, %3, %cst {dimension_numbers = #tpu.dot_dimension_numbers<[1], [0], [0], [1], [0, 0, 1, 1], [], []>} : vector<16x6xbf16>, vector<6x6xbf16>, vector<16x6xf32> -> vector<16x6xf32>
    %36 = vector.broadcast %21 : vector<1x6xf32> to vector<16x6xf32>
    %37 = arith.addf %35, %36 : vector<16x6xf32>
    %cst_25 = arith.constant dense<0xFF800000> : vector<16xf32>
    %38 = vector.multi_reduction <maximumf>, %37, %cst_25 [1] : vector<16x6xf32> to vector<16xf32>
    %39 = vector.shape_cast %38 : vector<16xf32> to vector<16x1xf32>
    %40 = vector.broadcast %39 : vector<16x1xf32> to vector<16x6xf32>
    %41 = arith.subf %37, %40 : vector<16x6xf32>
    %42 = math.exp %41 : vector<16x6xf32>
    %cst_26 = arith.constant dense<0.000000e+00> : vector<16xf32>
    %43 = vector.multi_reduction <add>, %42, %cst_26 [1] : vector<16x6xf32> to vector<16xf32>
    %44 = vector.shape_cast %43 : vector<16xf32> to vector<16x1xf32>
    %45 = vector.broadcast %44 : vector<16x1xf32> to vector<16x6xf32>
    %46 = arith.divf %42, %45 : vector<16x6xf32>
    %47 = arith.mulf %46, %30 : vector<16x6xf32>
    %48 = tpu.concatenate %29, %29, %29, %29, %29, %29, %29, %29 in 0 : vector<2x6xf32>, vector<2x6xf32>, vector<2x6xf32>, vector<2x6xf32>, vector<2x6xf32>, vector<2x6xf32>, vector<2x6xf32>, vector<2x6xf32> -> vector<16x6xf32>
    %49 = vector.broadcast %22 : vector<1x6xf32> to vector<16x6xf32>
    %50 = arith.mulf %32, %49 : vector<16x6xf32>
    %51 = vector.broadcast %23 : vector<1x6xf32> to vector<16x6xf32>
    %52 = arith.addf %50, %51 : vector<16x6xf32>
    %cst_27 = arith.constant 0.000000e+00 : f32
    %53 = vector.broadcast %cst_27 : f32 to vector<16x6xf32>
    %54 = arith.maximumf %52, %53 : vector<16x6xf32>
    %cst_28 = arith.constant 0.000000e+00 : f32
    %55 = vector.broadcast %cst_28 : f32 to vector<16x6xf32>
    %56 = arith.subf %55, %54 : vector<16x6xf32>
    %57 = math.exp %56 : vector<16x6xf32>
    %58 = arith.mulf %31, %47 : vector<16x6xf32>
    %cst_29 = arith.constant 1.000000e+00 : f32
    %59 = vector.broadcast %cst_29 : f32 to vector<16x6xf32>
    %60 = arith.subf %59, %31 : vector<16x6xf32>
    %61 = arith.mulf %57, %33 : vector<16x6xf32>
    %cst_30 = arith.constant 1.000000e+00 : f32
    %62 = vector.broadcast %cst_30 : f32 to vector<16x6xf32>
    %63 = arith.subf %62, %57 : vector<16x6xf32>
    %64 = arith.mulf %63, %48 : vector<16x6xf32>
    %65 = arith.addf %61, %64 : vector<16x6xf32>
    %66 = arith.mulf %60, %65 : vector<16x6xf32>
    %67 = arith.addf %58, %66 : vector<16x6xf32>
    %68 = tpu.concatenate %67, %31, %32 in 1 : vector<16x6xf32>, vector<16x6xf32>, vector<16x6xf32> -> vector<16x18xf32>
    %69 = arith.truncf %68 : vector<16x18xf32> to vector<16x18xbf16>
    %cst_31 = arith.constant dense<0.000000e+00> : vector<16x64xf32>
    %70 = tpu.matmul %69, %5, %cst_31 {dimension_numbers = #tpu.dot_dimension_numbers<[1], [0], [0], [1], [0, 0, 1, 1], [], []>} : vector<16x18xbf16>, vector<18x64xbf16>, vector<16x64xf32> -> vector<16x64xf32>
    %71 = vector.broadcast %24 : vector<1x64xf32> to vector<16x64xf32>
    %72 = arith.addf %70, %71 : vector<16x64xf32>
    %73 = vector.extract_strided_slice %72 {offsets = [0, 0], sizes = [16, 48], strides = [1, 1]} : vector<16x64xf32> to vector<16x48xf32>
    %74 = vector.extract_strided_slice %72 {offsets = [0, 48], sizes = [16, 16], strides = [1, 1]} : vector<16x64xf32> to vector<16x16xf32>
    %cst_32 = arith.constant 0.000000e+00 : f32
    %75 = vector.broadcast %cst_32 : f32 to vector<16x16xf32>
    %76 = arith.maximumf %74, %75 : vector<16x16xf32>
    %cst_33 = arith.constant 0.000000e+00 : f32
    %77 = vector.broadcast %cst_33 : f32 to vector<16x16xf32>
    %78 = arith.subf %77, %76 : vector<16x16xf32>
    %79 = math.exp %78 : vector<16x16xf32>
    %cst_34 = arith.constant 0.000000e+00 : f32
    %80 = vector.broadcast %cst_34 : f32 to vector<2x16xf32>
    %cst_35 = arith.constant 0.000000e+00 : f32
    %81 = vector.broadcast %cst_35 : f32 to vector<2x16xf32>
    %82 = vector.extract_strided_slice %73 {offsets = [0, 0], sizes = [2, 48], strides = [1, 1]} : vector<16x48xf32> to vector<2x48xf32>
    %83 = vector.extract_strided_slice %79 {offsets = [0, 0], sizes = [2, 16], strides = [1, 1]} : vector<16x16xf32> to vector<2x16xf32>
    %84 = arith.mulf %83, %80 : vector<2x16xf32>
    %85 = arith.truncf %84 : vector<2x16xf32> to vector<2x16xbf16>
    %cst_36 = arith.constant dense<0.000000e+00> : vector<2x32xf32>
    %86 = tpu.matmul %85, %8, %cst_36 {dimension_numbers = #tpu.dot_dimension_numbers<[1], [0], [0], [1], [0, 0, 1, 1], [], []>} : vector<2x16xbf16>, vector<16x32xbf16>, vector<2x32xf32> -> vector<2x32xf32>
    %87 = vector.extract_strided_slice %82 {offsets = [0, 0], sizes = [2, 16], strides = [1, 1]} : vector<2x48xf32> to vector<2x16xf32>
    %88 = vector.extract_strided_slice %86 {offsets = [0, 0], sizes = [2, 16], strides = [1, 1]} : vector<2x32xf32> to vector<2x16xf32>
    %89 = arith.addf %87, %88 : vector<2x16xf32>
    %90 = arith.negf %89 : vector<2x16xf32>
    %91 = math.exp %90 : vector<2x16xf32>
    %cst_37 = arith.constant 1.000000e+00 : f32
    %92 = vector.broadcast %cst_37 : f32 to vector<2x16xf32>
    %93 = arith.addf %92, %91 : vector<2x16xf32>
    %94 = arith.divf %92, %93 : vector<2x16xf32>
    %95 = vector.extract_strided_slice %82 {offsets = [0, 16], sizes = [2, 16], strides = [1, 1]} : vector<2x48xf32> to vector<2x16xf32>
    %96 = vector.extract_strided_slice %86 {offsets = [0, 16], sizes = [2, 16], strides = [1, 1]} : vector<2x32xf32> to vector<2x16xf32>
    %97 = arith.addf %95, %96 : vector<2x16xf32>
    %98 = arith.negf %97 : vector<2x16xf32>
    %99 = math.exp %98 : vector<2x16xf32>
    %cst_38 = arith.constant 1.000000e+00 : f32
    %100 = vector.broadcast %cst_38 : f32 to vector<2x16xf32>
    %101 = arith.addf %100, %99 : vector<2x16xf32>
    %102 = arith.divf %100, %101 : vector<2x16xf32>
    %103 = arith.mulf %102, %84 : vector<2x16xf32>
    %104 = arith.truncf %103 : vector<2x16xf32> to vector<2x16xbf16>
    %cst_39 = arith.constant dense<0.000000e+00> : vector<2x16xf32>
    %105 = tpu.matmul %104, %10, %cst_39 {dimension_numbers = #tpu.dot_dimension_numbers<[1], [0], [0], [1], [0, 0, 1, 1], [], []>} : vector<2x16xbf16>, vector<16x16xbf16>, vector<2x16xf32> -> vector<2x16xf32>
    %106 = vector.extract_strided_slice %82 {offsets = [0, 32], sizes = [2, 16], strides = [1, 1]} : vector<2x48xf32> to vector<2x16xf32>
    %107 = arith.addf %106, %105 : vector<2x16xf32>
    %108 = math.tanh %107 : vector<2x16xf32>
    %cst_40 = arith.constant 1.000000e+00 : f32
    %109 = vector.broadcast %cst_40 : f32 to vector<2x16xf32>
    %110 = arith.subf %109, %94 : vector<2x16xf32>
    %111 = arith.mulf %110, %84 : vector<2x16xf32>
    %112 = arith.mulf %94, %108 : vector<2x16xf32>
    %113 = arith.addf %111, %112 : vector<2x16xf32>
    %114 = tpu.concatenate %113, %81 in 1 : vector<2x16xf32>, vector<2x16xf32> -> vector<2x32xf32>
    %115 = arith.truncf %114 : vector<2x32xf32> to vector<2x32xbf16>
    %cst_41 = arith.constant dense<0.000000e+00> : vector<2x96xf32>
    %116 = tpu.matmul %115, %12, %cst_41 {dimension_numbers = #tpu.dot_dimension_numbers<[1], [0], [0], [1], [0, 0, 1, 1], [], []>} : vector<2x32xbf16>, vector<32x96xbf16>, vector<2x96xf32> -> vector<2x96xf32>
    %117 = vector.broadcast %25 : vector<1x96xf32> to vector<2x96xf32>
    %118 = arith.addf %116, %117 : vector<2x96xf32>
    %119 = vector.extract_strided_slice %118 {offsets = [0, 0], sizes = [2, 48], strides = [1, 1]} : vector<2x96xf32> to vector<2x48xf32>
    %120 = vector.extract_strided_slice %118 {offsets = [0, 48], sizes = [2, 48], strides = [1, 1]} : vector<2x96xf32> to vector<2x48xf32>
    %121 = vector.extract_strided_slice %119 {offsets = [0, 0], sizes = [2, 16], strides = [1, 1]} : vector<2x48xf32> to vector<2x16xf32>
    %122 = vector.extract_strided_slice %120 {offsets = [0, 0], sizes = [2, 16], strides = [1, 1]} : vector<2x48xf32> to vector<2x16xf32>
    %123 = arith.addf %121, %122 : vector<2x16xf32>
    %124 = arith.negf %123 : vector<2x16xf32>
    %125 = math.exp %124 : vector<2x16xf32>
    %cst_42 = arith.constant 1.000000e+00 : f32
    %126 = vector.broadcast %cst_42 : f32 to vector<2x16xf32>
    %127 = arith.addf %126, %125 : vector<2x16xf32>
    %128 = arith.divf %126, %127 : vector<2x16xf32>
    %129 = vector.extract_strided_slice %119 {offsets = [0, 16], sizes = [2, 16], strides = [1, 1]} : vector<2x48xf32> to vector<2x16xf32>
    %130 = vector.extract_strided_slice %120 {offsets = [0, 16], sizes = [2, 16], strides = [1, 1]} : vector<2x48xf32> to vector<2x16xf32>
    %131 = arith.addf %129, %130 : vector<2x16xf32>
    %132 = arith.negf %131 : vector<2x16xf32>
    %133 = math.exp %132 : vector<2x16xf32>
    %cst_43 = arith.constant 1.000000e+00 : f32
    %134 = vector.broadcast %cst_43 : f32 to vector<2x16xf32>
    %135 = arith.addf %134, %133 : vector<2x16xf32>
    %136 = arith.divf %134, %135 : vector<2x16xf32>
    %137 = vector.extract_strided_slice %119 {offsets = [0, 32], sizes = [2, 16], strides = [1, 1]} : vector<2x48xf32> to vector<2x16xf32>
    %138 = vector.extract_strided_slice %120 {offsets = [0, 32], sizes = [2, 16], strides = [1, 1]} : vector<2x48xf32> to vector<2x16xf32>
    %139 = arith.mulf %128, %138 : vector<2x16xf32>
    %140 = arith.addf %137, %139 : vector<2x16xf32>
    %141 = math.tanh %140 : vector<2x16xf32>
    %cst_44 = arith.constant 1.000000e+00 : f32
    %142 = vector.broadcast %cst_44 : f32 to vector<2x16xf32>
    %143 = arith.subf %142, %136 : vector<2x16xf32>
    %144 = arith.mulf %143, %141 : vector<2x16xf32>
    %145 = arith.mulf %136, %81 : vector<2x16xf32>
    %146 = arith.addf %144, %145 : vector<2x16xf32>
    %147 = vector.extract_strided_slice %73 {offsets = [2, 0], sizes = [2, 48], strides = [1, 1]} : vector<16x48xf32> to vector<2x48xf32>
    %148 = vector.extract_strided_slice %79 {offsets = [2, 0], sizes = [2, 16], strides = [1, 1]} : vector<16x16xf32> to vector<2x16xf32>
    %149 = arith.mulf %148, %113 : vector<2x16xf32>
    %150 = arith.truncf %149 : vector<2x16xf32> to vector<2x16xbf16>
    %cst_45 = arith.constant dense<0.000000e+00> : vector<2x32xf32>
    %151 = tpu.matmul %150, %8, %cst_45 {dimension_numbers = #tpu.dot_dimension_numbers<[1], [0], [0], [1], [0, 0, 1, 1], [], []>} : vector<2x16xbf16>, vector<16x32xbf16>, vector<2x32xf32> -> vector<2x32xf32>
    %152 = vector.extract_strided_slice %147 {offsets = [0, 0], sizes = [2, 16], strides = [1, 1]} : vector<2x48xf32> to vector<2x16xf32>
    %153 = vector.extract_strided_slice %151 {offsets = [0, 0], sizes = [2, 16], strides = [1, 1]} : vector<2x32xf32> to vector<2x16xf32>
    %154 = arith.addf %152, %153 : vector<2x16xf32>
    %155 = arith.negf %154 : vector<2x16xf32>
    %156 = math.exp %155 : vector<2x16xf32>
    %cst_46 = arith.constant 1.000000e+00 : f32
    %157 = vector.broadcast %cst_46 : f32 to vector<2x16xf32>
    %158 = arith.addf %157, %156 : vector<2x16xf32>
    %159 = arith.divf %157, %158 : vector<2x16xf32>
    %160 = vector.extract_strided_slice %147 {offsets = [0, 16], sizes = [2, 16], strides = [1, 1]} : vector<2x48xf32> to vector<2x16xf32>
    %161 = vector.extract_strided_slice %151 {offsets = [0, 16], sizes = [2, 16], strides = [1, 1]} : vector<2x32xf32> to vector<2x16xf32>
    %162 = arith.addf %160, %161 : vector<2x16xf32>
    %163 = arith.negf %162 : vector<2x16xf32>
    %164 = math.exp %163 : vector<2x16xf32>
    %cst_47 = arith.constant 1.000000e+00 : f32
    %165 = vector.broadcast %cst_47 : f32 to vector<2x16xf32>
    %166 = arith.addf %165, %164 : vector<2x16xf32>
    %167 = arith.divf %165, %166 : vector<2x16xf32>
    %168 = arith.mulf %167, %149 : vector<2x16xf32>
    %169 = arith.truncf %168 : vector<2x16xf32> to vector<2x16xbf16>
    %cst_48 = arith.constant dense<0.000000e+00> : vector<2x16xf32>
    %170 = tpu.matmul %169, %10, %cst_48 {dimension_numbers = #tpu.dot_dimension_numbers<[1], [0], [0], [1], [0, 0, 1, 1], [], []>} : vector<2x16xbf16>, vector<16x16xbf16>, vector<2x16xf32> -> vector<2x16xf32>
    %171 = vector.extract_strided_slice %147 {offsets = [0, 32], sizes = [2, 16], strides = [1, 1]} : vector<2x48xf32> to vector<2x16xf32>
    %172 = arith.addf %171, %170 : vector<2x16xf32>
    %173 = math.tanh %172 : vector<2x16xf32>
    %cst_49 = arith.constant 1.000000e+00 : f32
    %174 = vector.broadcast %cst_49 : f32 to vector<2x16xf32>
    %175 = arith.subf %174, %159 : vector<2x16xf32>
    %176 = arith.mulf %175, %149 : vector<2x16xf32>
    %177 = arith.mulf %159, %173 : vector<2x16xf32>
    %178 = arith.addf %176, %177 : vector<2x16xf32>
    %179 = tpu.concatenate %178, %146 in 1 : vector<2x16xf32>, vector<2x16xf32> -> vector<2x32xf32>
    %180 = arith.truncf %179 : vector<2x32xf32> to vector<2x32xbf16>
    %cst_50 = arith.constant dense<0.000000e+00> : vector<2x96xf32>
    %181 = tpu.matmul %180, %12, %cst_50 {dimension_numbers = #tpu.dot_dimension_numbers<[1], [0], [0], [1], [0, 0, 1, 1], [], []>} : vector<2x32xbf16>, vector<32x96xbf16>, vector<2x96xf32> -> vector<2x96xf32>
    %182 = vector.broadcast %25 : vector<1x96xf32> to vector<2x96xf32>
    %183 = arith.addf %181, %182 : vector<2x96xf32>
    %184 = vector.extract_strided_slice %183 {offsets = [0, 0], sizes = [2, 48], strides = [1, 1]} : vector<2x96xf32> to vector<2x48xf32>
    %185 = vector.extract_strided_slice %183 {offsets = [0, 48], sizes = [2, 48], strides = [1, 1]} : vector<2x96xf32> to vector<2x48xf32>
    %186 = vector.extract_strided_slice %184 {offsets = [0, 0], sizes = [2, 16], strides = [1, 1]} : vector<2x48xf32> to vector<2x16xf32>
    %187 = vector.extract_strided_slice %185 {offsets = [0, 0], sizes = [2, 16], strides = [1, 1]} : vector<2x48xf32> to vector<2x16xf32>
    %188 = arith.addf %186, %187 : vector<2x16xf32>
    %189 = arith.negf %188 : vector<2x16xf32>
    %190 = math.exp %189 : vector<2x16xf32>
    %cst_51 = arith.constant 1.000000e+00 : f32
    %191 = vector.broadcast %cst_51 : f32 to vector<2x16xf32>
    %192 = arith.addf %191, %190 : vector<2x16xf32>
    %193 = arith.divf %191, %192 : vector<2x16xf32>
    %194 = vector.extract_strided_slice %184 {offsets = [0, 16], sizes = [2, 16], strides = [1, 1]} : vector<2x48xf32> to vector<2x16xf32>
    %195 = vector.extract_strided_slice %185 {offsets = [0, 16], sizes = [2, 16], strides = [1, 1]} : vector<2x48xf32> to vector<2x16xf32>
    %196 = arith.addf %194, %195 : vector<2x16xf32>
    %197 = arith.negf %196 : vector<2x16xf32>
    %198 = math.exp %197 : vector<2x16xf32>
    %cst_52 = arith.constant 1.000000e+00 : f32
    %199 = vector.broadcast %cst_52 : f32 to vector<2x16xf32>
    %200 = arith.addf %199, %198 : vector<2x16xf32>
    %201 = arith.divf %199, %200 : vector<2x16xf32>
    %202 = vector.extract_strided_slice %184 {offsets = [0, 32], sizes = [2, 16], strides = [1, 1]} : vector<2x48xf32> to vector<2x16xf32>
    %203 = vector.extract_strided_slice %185 {offsets = [0, 32], sizes = [2, 16], strides = [1, 1]} : vector<2x48xf32> to vector<2x16xf32>
    %204 = arith.mulf %193, %203 : vector<2x16xf32>
    %205 = arith.addf %202, %204 : vector<2x16xf32>
    %206 = math.tanh %205 : vector<2x16xf32>
    %cst_53 = arith.constant 1.000000e+00 : f32
    %207 = vector.broadcast %cst_53 : f32 to vector<2x16xf32>
    %208 = arith.subf %207, %201 : vector<2x16xf32>
    %209 = arith.mulf %208, %206 : vector<2x16xf32>
    %210 = arith.mulf %201, %146 : vector<2x16xf32>
    %211 = arith.addf %209, %210 : vector<2x16xf32>
    %212 = vector.extract_strided_slice %73 {offsets = [4, 0], sizes = [2, 48], strides = [1, 1]} : vector<16x48xf32> to vector<2x48xf32>
    %213 = vector.extract_strided_slice %79 {offsets = [4, 0], sizes = [2, 16], strides = [1, 1]} : vector<16x16xf32> to vector<2x16xf32>
    %214 = arith.mulf %213, %178 : vector<2x16xf32>
    %215 = arith.truncf %214 : vector<2x16xf32> to vector<2x16xbf16>
    %cst_54 = arith.constant dense<0.000000e+00> : vector<2x32xf32>
    %216 = tpu.matmul %215, %8, %cst_54 {dimension_numbers = #tpu.dot_dimension_numbers<[1], [0], [0], [1], [0, 0, 1, 1], [], []>} : vector<2x16xbf16>, vector<16x32xbf16>, vector<2x32xf32> -> vector<2x32xf32>
    %217 = vector.extract_strided_slice %212 {offsets = [0, 0], sizes = [2, 16], strides = [1, 1]} : vector<2x48xf32> to vector<2x16xf32>
    %218 = vector.extract_strided_slice %216 {offsets = [0, 0], sizes = [2, 16], strides = [1, 1]} : vector<2x32xf32> to vector<2x16xf32>
    %219 = arith.addf %217, %218 : vector<2x16xf32>
    %220 = arith.negf %219 : vector<2x16xf32>
    %221 = math.exp %220 : vector<2x16xf32>
    %cst_55 = arith.constant 1.000000e+00 : f32
    %222 = vector.broadcast %cst_55 : f32 to vector<2x16xf32>
    %223 = arith.addf %222, %221 : vector<2x16xf32>
    %224 = arith.divf %222, %223 : vector<2x16xf32>
    %225 = vector.extract_strided_slice %212 {offsets = [0, 16], sizes = [2, 16], strides = [1, 1]} : vector<2x48xf32> to vector<2x16xf32>
    %226 = vector.extract_strided_slice %216 {offsets = [0, 16], sizes = [2, 16], strides = [1, 1]} : vector<2x32xf32> to vector<2x16xf32>
    %227 = arith.addf %225, %226 : vector<2x16xf32>
    %228 = arith.negf %227 : vector<2x16xf32>
    %229 = math.exp %228 : vector<2x16xf32>
    %cst_56 = arith.constant 1.000000e+00 : f32
    %230 = vector.broadcast %cst_56 : f32 to vector<2x16xf32>
    %231 = arith.addf %230, %229 : vector<2x16xf32>
    %232 = arith.divf %230, %231 : vector<2x16xf32>
    %233 = arith.mulf %232, %214 : vector<2x16xf32>
    %234 = arith.truncf %233 : vector<2x16xf32> to vector<2x16xbf16>
    %cst_57 = arith.constant dense<0.000000e+00> : vector<2x16xf32>
    %235 = tpu.matmul %234, %10, %cst_57 {dimension_numbers = #tpu.dot_dimension_numbers<[1], [0], [0], [1], [0, 0, 1, 1], [], []>} : vector<2x16xbf16>, vector<16x16xbf16>, vector<2x16xf32> -> vector<2x16xf32>
    %236 = vector.extract_strided_slice %212 {offsets = [0, 32], sizes = [2, 16], strides = [1, 1]} : vector<2x48xf32> to vector<2x16xf32>
    %237 = arith.addf %236, %235 : vector<2x16xf32>
    %238 = math.tanh %237 : vector<2x16xf32>
    %cst_58 = arith.constant 1.000000e+00 : f32
    %239 = vector.broadcast %cst_58 : f32 to vector<2x16xf32>
    %240 = arith.subf %239, %224 : vector<2x16xf32>
    %241 = arith.mulf %240, %214 : vector<2x16xf32>
    %242 = arith.mulf %224, %238 : vector<2x16xf32>
    %243 = arith.addf %241, %242 : vector<2x16xf32>
    %244 = tpu.concatenate %243, %211 in 1 : vector<2x16xf32>, vector<2x16xf32> -> vector<2x32xf32>
    %245 = arith.truncf %244 : vector<2x32xf32> to vector<2x32xbf16>
    %cst_59 = arith.constant dense<0.000000e+00> : vector<2x96xf32>
    %246 = tpu.matmul %245, %12, %cst_59 {dimension_numbers = #tpu.dot_dimension_numbers<[1], [0], [0], [1], [0, 0, 1, 1], [], []>} : vector<2x32xbf16>, vector<32x96xbf16>, vector<2x96xf32> -> vector<2x96xf32>
    %247 = vector.broadcast %25 : vector<1x96xf32> to vector<2x96xf32>
    %248 = arith.addf %246, %247 : vector<2x96xf32>
    %249 = vector.extract_strided_slice %248 {offsets = [0, 0], sizes = [2, 48], strides = [1, 1]} : vector<2x96xf32> to vector<2x48xf32>
    %250 = vector.extract_strided_slice %248 {offsets = [0, 48], sizes = [2, 48], strides = [1, 1]} : vector<2x96xf32> to vector<2x48xf32>
    %251 = vector.extract_strided_slice %249 {offsets = [0, 0], sizes = [2, 16], strides = [1, 1]} : vector<2x48xf32> to vector<2x16xf32>
    %252 = vector.extract_strided_slice %250 {offsets = [0, 0], sizes = [2, 16], strides = [1, 1]} : vector<2x48xf32> to vector<2x16xf32>
    %253 = arith.addf %251, %252 : vector<2x16xf32>
    %254 = arith.negf %253 : vector<2x16xf32>
    %255 = math.exp %254 : vector<2x16xf32>
    %cst_60 = arith.constant 1.000000e+00 : f32
    %256 = vector.broadcast %cst_60 : f32 to vector<2x16xf32>
    %257 = arith.addf %256, %255 : vector<2x16xf32>
    %258 = arith.divf %256, %257 : vector<2x16xf32>
    %259 = vector.extract_strided_slice %249 {offsets = [0, 16], sizes = [2, 16], strides = [1, 1]} : vector<2x48xf32> to vector<2x16xf32>
    %260 = vector.extract_strided_slice %250 {offsets = [0, 16], sizes = [2, 16], strides = [1, 1]} : vector<2x48xf32> to vector<2x16xf32>
    %261 = arith.addf %259, %260 : vector<2x16xf32>
    %262 = arith.negf %261 : vector<2x16xf32>
    %263 = math.exp %262 : vector<2x16xf32>
    %cst_61 = arith.constant 1.000000e+00 : f32
    %264 = vector.broadcast %cst_61 : f32 to vector<2x16xf32>
    %265 = arith.addf %264, %263 : vector<2x16xf32>
    %266 = arith.divf %264, %265 : vector<2x16xf32>
    %267 = vector.extract_strided_slice %249 {offsets = [0, 32], sizes = [2, 16], strides = [1, 1]} : vector<2x48xf32> to vector<2x16xf32>
    %268 = vector.extract_strided_slice %250 {offsets = [0, 32], sizes = [2, 16], strides = [1, 1]} : vector<2x48xf32> to vector<2x16xf32>
    %269 = arith.mulf %258, %268 : vector<2x16xf32>
    %270 = arith.addf %267, %269 : vector<2x16xf32>
    %271 = math.tanh %270 : vector<2x16xf32>
    %cst_62 = arith.constant 1.000000e+00 : f32
    %272 = vector.broadcast %cst_62 : f32 to vector<2x16xf32>
    %273 = arith.subf %272, %266 : vector<2x16xf32>
    %274 = arith.mulf %273, %271 : vector<2x16xf32>
    %275 = arith.mulf %266, %211 : vector<2x16xf32>
    %276 = arith.addf %274, %275 : vector<2x16xf32>
    %277 = vector.extract_strided_slice %73 {offsets = [6, 0], sizes = [2, 48], strides = [1, 1]} : vector<16x48xf32> to vector<2x48xf32>
    %278 = vector.extract_strided_slice %79 {offsets = [6, 0], sizes = [2, 16], strides = [1, 1]} : vector<16x16xf32> to vector<2x16xf32>
    %279 = arith.mulf %278, %243 : vector<2x16xf32>
    %280 = arith.truncf %279 : vector<2x16xf32> to vector<2x16xbf16>
    %cst_63 = arith.constant dense<0.000000e+00> : vector<2x32xf32>
    %281 = tpu.matmul %280, %8, %cst_63 {dimension_numbers = #tpu.dot_dimension_numbers<[1], [0], [0], [1], [0, 0, 1, 1], [], []>} : vector<2x16xbf16>, vector<16x32xbf16>, vector<2x32xf32> -> vector<2x32xf32>
    %282 = vector.extract_strided_slice %277 {offsets = [0, 0], sizes = [2, 16], strides = [1, 1]} : vector<2x48xf32> to vector<2x16xf32>
    %283 = vector.extract_strided_slice %281 {offsets = [0, 0], sizes = [2, 16], strides = [1, 1]} : vector<2x32xf32> to vector<2x16xf32>
    %284 = arith.addf %282, %283 : vector<2x16xf32>
    %285 = arith.negf %284 : vector<2x16xf32>
    %286 = math.exp %285 : vector<2x16xf32>
    %cst_64 = arith.constant 1.000000e+00 : f32
    %287 = vector.broadcast %cst_64 : f32 to vector<2x16xf32>
    %288 = arith.addf %287, %286 : vector<2x16xf32>
    %289 = arith.divf %287, %288 : vector<2x16xf32>
    %290 = vector.extract_strided_slice %277 {offsets = [0, 16], sizes = [2, 16], strides = [1, 1]} : vector<2x48xf32> to vector<2x16xf32>
    %291 = vector.extract_strided_slice %281 {offsets = [0, 16], sizes = [2, 16], strides = [1, 1]} : vector<2x32xf32> to vector<2x16xf32>
    %292 = arith.addf %290, %291 : vector<2x16xf32>
    %293 = arith.negf %292 : vector<2x16xf32>
    %294 = math.exp %293 : vector<2x16xf32>
    %cst_65 = arith.constant 1.000000e+00 : f32
    %295 = vector.broadcast %cst_65 : f32 to vector<2x16xf32>
    %296 = arith.addf %295, %294 : vector<2x16xf32>
    %297 = arith.divf %295, %296 : vector<2x16xf32>
    %298 = arith.mulf %297, %279 : vector<2x16xf32>
    %299 = arith.truncf %298 : vector<2x16xf32> to vector<2x16xbf16>
    %cst_66 = arith.constant dense<0.000000e+00> : vector<2x16xf32>
    %300 = tpu.matmul %299, %10, %cst_66 {dimension_numbers = #tpu.dot_dimension_numbers<[1], [0], [0], [1], [0, 0, 1, 1], [], []>} : vector<2x16xbf16>, vector<16x16xbf16>, vector<2x16xf32> -> vector<2x16xf32>
    %301 = vector.extract_strided_slice %277 {offsets = [0, 32], sizes = [2, 16], strides = [1, 1]} : vector<2x48xf32> to vector<2x16xf32>
    %302 = arith.addf %301, %300 : vector<2x16xf32>
    %303 = math.tanh %302 : vector<2x16xf32>
    %cst_67 = arith.constant 1.000000e+00 : f32
    %304 = vector.broadcast %cst_67 : f32 to vector<2x16xf32>
    %305 = arith.subf %304, %289 : vector<2x16xf32>
    %306 = arith.mulf %305, %279 : vector<2x16xf32>
    %307 = arith.mulf %289, %303 : vector<2x16xf32>
    %308 = arith.addf %306, %307 : vector<2x16xf32>
    %309 = tpu.concatenate %308, %276 in 1 : vector<2x16xf32>, vector<2x16xf32> -> vector<2x32xf32>
    %310 = arith.truncf %309 : vector<2x32xf32> to vector<2x32xbf16>
    %cst_68 = arith.constant dense<0.000000e+00> : vector<2x96xf32>
    %311 = tpu.matmul %310, %12, %cst_68 {dimension_numbers = #tpu.dot_dimension_numbers<[1], [0], [0], [1], [0, 0, 1, 1], [], []>} : vector<2x32xbf16>, vector<32x96xbf16>, vector<2x96xf32> -> vector<2x96xf32>
    %312 = vector.broadcast %25 : vector<1x96xf32> to vector<2x96xf32>
    %313 = arith.addf %311, %312 : vector<2x96xf32>
    %314 = vector.extract_strided_slice %313 {offsets = [0, 0], sizes = [2, 48], strides = [1, 1]} : vector<2x96xf32> to vector<2x48xf32>
    %315 = vector.extract_strided_slice %313 {offsets = [0, 48], sizes = [2, 48], strides = [1, 1]} : vector<2x96xf32> to vector<2x48xf32>
    %316 = vector.extract_strided_slice %314 {offsets = [0, 0], sizes = [2, 16], strides = [1, 1]} : vector<2x48xf32> to vector<2x16xf32>
    %317 = vector.extract_strided_slice %315 {offsets = [0, 0], sizes = [2, 16], strides = [1, 1]} : vector<2x48xf32> to vector<2x16xf32>
    %318 = arith.addf %316, %317 : vector<2x16xf32>
    %319 = arith.negf %318 : vector<2x16xf32>
    %320 = math.exp %319 : vector<2x16xf32>
    %cst_69 = arith.constant 1.000000e+00 : f32
    %321 = vector.broadcast %cst_69 : f32 to vector<2x16xf32>
    %322 = arith.addf %321, %320 : vector<2x16xf32>
    %323 = arith.divf %321, %322 : vector<2x16xf32>
    %324 = vector.extract_strided_slice %314 {offsets = [0, 16], sizes = [2, 16], strides = [1, 1]} : vector<2x48xf32> to vector<2x16xf32>
    %325 = vector.extract_strided_slice %315 {offsets = [0, 16], sizes = [2, 16], strides = [1, 1]} : vector<2x48xf32> to vector<2x16xf32>
    %326 = arith.addf %324, %325 : vector<2x16xf32>
    %327 = arith.negf %326 : vector<2x16xf32>
    %328 = math.exp %327 : vector<2x16xf32>
    %cst_70 = arith.constant 1.000000e+00 : f32
    %329 = vector.broadcast %cst_70 : f32 to vector<2x16xf32>
    %330 = arith.addf %329, %328 : vector<2x16xf32>
    %331 = arith.divf %329, %330 : vector<2x16xf32>
    %332 = vector.extract_strided_slice %314 {offsets = [0, 32], sizes = [2, 16], strides = [1, 1]} : vector<2x48xf32> to vector<2x16xf32>
    %333 = vector.extract_strided_slice %315 {offsets = [0, 32], sizes = [2, 16], strides = [1, 1]} : vector<2x48xf32> to vector<2x16xf32>
    %334 = arith.mulf %323, %333 : vector<2x16xf32>
    %335 = arith.addf %332, %334 : vector<2x16xf32>
    %336 = math.tanh %335 : vector<2x16xf32>
    %cst_71 = arith.constant 1.000000e+00 : f32
    %337 = vector.broadcast %cst_71 : f32 to vector<2x16xf32>
    %338 = arith.subf %337, %331 : vector<2x16xf32>
    %339 = arith.mulf %338, %336 : vector<2x16xf32>
    %340 = arith.mulf %331, %276 : vector<2x16xf32>
    %341 = arith.addf %339, %340 : vector<2x16xf32>
    %342 = vector.extract_strided_slice %73 {offsets = [8, 0], sizes = [2, 48], strides = [1, 1]} : vector<16x48xf32> to vector<2x48xf32>
    %343 = vector.extract_strided_slice %79 {offsets = [8, 0], sizes = [2, 16], strides = [1, 1]} : vector<16x16xf32> to vector<2x16xf32>
    %344 = arith.mulf %343, %308 : vector<2x16xf32>
    %345 = arith.truncf %344 : vector<2x16xf32> to vector<2x16xbf16>
    %cst_72 = arith.constant dense<0.000000e+00> : vector<2x32xf32>
    %346 = tpu.matmul %345, %8, %cst_72 {dimension_numbers = #tpu.dot_dimension_numbers<[1], [0], [0], [1], [0, 0, 1, 1], [], []>} : vector<2x16xbf16>, vector<16x32xbf16>, vector<2x32xf32> -> vector<2x32xf32>
    %347 = vector.extract_strided_slice %342 {offsets = [0, 0], sizes = [2, 16], strides = [1, 1]} : vector<2x48xf32> to vector<2x16xf32>
    %348 = vector.extract_strided_slice %346 {offsets = [0, 0], sizes = [2, 16], strides = [1, 1]} : vector<2x32xf32> to vector<2x16xf32>
    %349 = arith.addf %347, %348 : vector<2x16xf32>
    %350 = arith.negf %349 : vector<2x16xf32>
    %351 = math.exp %350 : vector<2x16xf32>
    %cst_73 = arith.constant 1.000000e+00 : f32
    %352 = vector.broadcast %cst_73 : f32 to vector<2x16xf32>
    %353 = arith.addf %352, %351 : vector<2x16xf32>
    %354 = arith.divf %352, %353 : vector<2x16xf32>
    %355 = vector.extract_strided_slice %342 {offsets = [0, 16], sizes = [2, 16], strides = [1, 1]} : vector<2x48xf32> to vector<2x16xf32>
    %356 = vector.extract_strided_slice %346 {offsets = [0, 16], sizes = [2, 16], strides = [1, 1]} : vector<2x32xf32> to vector<2x16xf32>
    %357 = arith.addf %355, %356 : vector<2x16xf32>
    %358 = arith.negf %357 : vector<2x16xf32>
    %359 = math.exp %358 : vector<2x16xf32>
    %cst_74 = arith.constant 1.000000e+00 : f32
    %360 = vector.broadcast %cst_74 : f32 to vector<2x16xf32>
    %361 = arith.addf %360, %359 : vector<2x16xf32>
    %362 = arith.divf %360, %361 : vector<2x16xf32>
    %363 = arith.mulf %362, %344 : vector<2x16xf32>
    %364 = arith.truncf %363 : vector<2x16xf32> to vector<2x16xbf16>
    %cst_75 = arith.constant dense<0.000000e+00> : vector<2x16xf32>
    %365 = tpu.matmul %364, %10, %cst_75 {dimension_numbers = #tpu.dot_dimension_numbers<[1], [0], [0], [1], [0, 0, 1, 1], [], []>} : vector<2x16xbf16>, vector<16x16xbf16>, vector<2x16xf32> -> vector<2x16xf32>
    %366 = vector.extract_strided_slice %342 {offsets = [0, 32], sizes = [2, 16], strides = [1, 1]} : vector<2x48xf32> to vector<2x16xf32>
    %367 = arith.addf %366, %365 : vector<2x16xf32>
    %368 = math.tanh %367 : vector<2x16xf32>
    %cst_76 = arith.constant 1.000000e+00 : f32
    %369 = vector.broadcast %cst_76 : f32 to vector<2x16xf32>
    %370 = arith.subf %369, %354 : vector<2x16xf32>
    %371 = arith.mulf %370, %344 : vector<2x16xf32>
    %372 = arith.mulf %354, %368 : vector<2x16xf32>
    %373 = arith.addf %371, %372 : vector<2x16xf32>
    %374 = tpu.concatenate %373, %341 in 1 : vector<2x16xf32>, vector<2x16xf32> -> vector<2x32xf32>
    %375 = arith.truncf %374 : vector<2x32xf32> to vector<2x32xbf16>
    %cst_77 = arith.constant dense<0.000000e+00> : vector<2x96xf32>
    %376 = tpu.matmul %375, %12, %cst_77 {dimension_numbers = #tpu.dot_dimension_numbers<[1], [0], [0], [1], [0, 0, 1, 1], [], []>} : vector<2x32xbf16>, vector<32x96xbf16>, vector<2x96xf32> -> vector<2x96xf32>
    %377 = vector.broadcast %25 : vector<1x96xf32> to vector<2x96xf32>
    %378 = arith.addf %376, %377 : vector<2x96xf32>
    %379 = vector.extract_strided_slice %378 {offsets = [0, 0], sizes = [2, 48], strides = [1, 1]} : vector<2x96xf32> to vector<2x48xf32>
    %380 = vector.extract_strided_slice %378 {offsets = [0, 48], sizes = [2, 48], strides = [1, 1]} : vector<2x96xf32> to vector<2x48xf32>
    %381 = vector.extract_strided_slice %379 {offsets = [0, 0], sizes = [2, 16], strides = [1, 1]} : vector<2x48xf32> to vector<2x16xf32>
    %382 = vector.extract_strided_slice %380 {offsets = [0, 0], sizes = [2, 16], strides = [1, 1]} : vector<2x48xf32> to vector<2x16xf32>
    %383 = arith.addf %381, %382 : vector<2x16xf32>
    %384 = arith.negf %383 : vector<2x16xf32>
    %385 = math.exp %384 : vector<2x16xf32>
    %cst_78 = arith.constant 1.000000e+00 : f32
    %386 = vector.broadcast %cst_78 : f32 to vector<2x16xf32>
    %387 = arith.addf %386, %385 : vector<2x16xf32>
    %388 = arith.divf %386, %387 : vector<2x16xf32>
    %389 = vector.extract_strided_slice %379 {offsets = [0, 16], sizes = [2, 16], strides = [1, 1]} : vector<2x48xf32> to vector<2x16xf32>
    %390 = vector.extract_strided_slice %380 {offsets = [0, 16], sizes = [2, 16], strides = [1, 1]} : vector<2x48xf32> to vector<2x16xf32>
    %391 = arith.addf %389, %390 : vector<2x16xf32>
    %392 = arith.negf %391 : vector<2x16xf32>
    %393 = math.exp %392 : vector<2x16xf32>
    %cst_79 = arith.constant 1.000000e+00 : f32
    %394 = vector.broadcast %cst_79 : f32 to vector<2x16xf32>
    %395 = arith.addf %394, %393 : vector<2x16xf32>
    %396 = arith.divf %394, %395 : vector<2x16xf32>
    %397 = vector.extract_strided_slice %379 {offsets = [0, 32], sizes = [2, 16], strides = [1, 1]} : vector<2x48xf32> to vector<2x16xf32>
    %398 = vector.extract_strided_slice %380 {offsets = [0, 32], sizes = [2, 16], strides = [1, 1]} : vector<2x48xf32> to vector<2x16xf32>
    %399 = arith.mulf %388, %398 : vector<2x16xf32>
    %400 = arith.addf %397, %399 : vector<2x16xf32>
    %401 = math.tanh %400 : vector<2x16xf32>
    %cst_80 = arith.constant 1.000000e+00 : f32
    %402 = vector.broadcast %cst_80 : f32 to vector<2x16xf32>
    %403 = arith.subf %402, %396 : vector<2x16xf32>
    %404 = arith.mulf %403, %401 : vector<2x16xf32>
    %405 = arith.mulf %396, %341 : vector<2x16xf32>
    %406 = arith.addf %404, %405 : vector<2x16xf32>
    %407 = vector.extract_strided_slice %73 {offsets = [10, 0], sizes = [2, 48], strides = [1, 1]} : vector<16x48xf32> to vector<2x48xf32>
    %408 = vector.extract_strided_slice %79 {offsets = [10, 0], sizes = [2, 16], strides = [1, 1]} : vector<16x16xf32> to vector<2x16xf32>
    %409 = arith.mulf %408, %373 : vector<2x16xf32>
    %410 = arith.truncf %409 : vector<2x16xf32> to vector<2x16xbf16>
    %cst_81 = arith.constant dense<0.000000e+00> : vector<2x32xf32>
    %411 = tpu.matmul %410, %8, %cst_81 {dimension_numbers = #tpu.dot_dimension_numbers<[1], [0], [0], [1], [0, 0, 1, 1], [], []>} : vector<2x16xbf16>, vector<16x32xbf16>, vector<2x32xf32> -> vector<2x32xf32>
    %412 = vector.extract_strided_slice %407 {offsets = [0, 0], sizes = [2, 16], strides = [1, 1]} : vector<2x48xf32> to vector<2x16xf32>
    %413 = vector.extract_strided_slice %411 {offsets = [0, 0], sizes = [2, 16], strides = [1, 1]} : vector<2x32xf32> to vector<2x16xf32>
    %414 = arith.addf %412, %413 : vector<2x16xf32>
    %415 = arith.negf %414 : vector<2x16xf32>
    %416 = math.exp %415 : vector<2x16xf32>
    %cst_82 = arith.constant 1.000000e+00 : f32
    %417 = vector.broadcast %cst_82 : f32 to vector<2x16xf32>
    %418 = arith.addf %417, %416 : vector<2x16xf32>
    %419 = arith.divf %417, %418 : vector<2x16xf32>
    %420 = vector.extract_strided_slice %407 {offsets = [0, 16], sizes = [2, 16], strides = [1, 1]} : vector<2x48xf32> to vector<2x16xf32>
    %421 = vector.extract_strided_slice %411 {offsets = [0, 16], sizes = [2, 16], strides = [1, 1]} : vector<2x32xf32> to vector<2x16xf32>
    %422 = arith.addf %420, %421 : vector<2x16xf32>
    %423 = arith.negf %422 : vector<2x16xf32>
    %424 = math.exp %423 : vector<2x16xf32>
    %cst_83 = arith.constant 1.000000e+00 : f32
    %425 = vector.broadcast %cst_83 : f32 to vector<2x16xf32>
    %426 = arith.addf %425, %424 : vector<2x16xf32>
    %427 = arith.divf %425, %426 : vector<2x16xf32>
    %428 = arith.mulf %427, %409 : vector<2x16xf32>
    %429 = arith.truncf %428 : vector<2x16xf32> to vector<2x16xbf16>
    %cst_84 = arith.constant dense<0.000000e+00> : vector<2x16xf32>
    %430 = tpu.matmul %429, %10, %cst_84 {dimension_numbers = #tpu.dot_dimension_numbers<[1], [0], [0], [1], [0, 0, 1, 1], [], []>} : vector<2x16xbf16>, vector<16x16xbf16>, vector<2x16xf32> -> vector<2x16xf32>
    %431 = vector.extract_strided_slice %407 {offsets = [0, 32], sizes = [2, 16], strides = [1, 1]} : vector<2x48xf32> to vector<2x16xf32>
    %432 = arith.addf %431, %430 : vector<2x16xf32>
    %433 = math.tanh %432 : vector<2x16xf32>
    %cst_85 = arith.constant 1.000000e+00 : f32
    %434 = vector.broadcast %cst_85 : f32 to vector<2x16xf32>
    %435 = arith.subf %434, %419 : vector<2x16xf32>
    %436 = arith.mulf %435, %409 : vector<2x16xf32>
    %437 = arith.mulf %419, %433 : vector<2x16xf32>
    %438 = arith.addf %436, %437 : vector<2x16xf32>
    %439 = tpu.concatenate %438, %406 in 1 : vector<2x16xf32>, vector<2x16xf32> -> vector<2x32xf32>
    %440 = arith.truncf %439 : vector<2x32xf32> to vector<2x32xbf16>
    %cst_86 = arith.constant dense<0.000000e+00> : vector<2x96xf32>
    %441 = tpu.matmul %440, %12, %cst_86 {dimension_numbers = #tpu.dot_dimension_numbers<[1], [0], [0], [1], [0, 0, 1, 1], [], []>} : vector<2x32xbf16>, vector<32x96xbf16>, vector<2x96xf32> -> vector<2x96xf32>
    %442 = vector.broadcast %25 : vector<1x96xf32> to vector<2x96xf32>
    %443 = arith.addf %441, %442 : vector<2x96xf32>
    %444 = vector.extract_strided_slice %443 {offsets = [0, 0], sizes = [2, 48], strides = [1, 1]} : vector<2x96xf32> to vector<2x48xf32>
    %445 = vector.extract_strided_slice %443 {offsets = [0, 48], sizes = [2, 48], strides = [1, 1]} : vector<2x96xf32> to vector<2x48xf32>
    %446 = vector.extract_strided_slice %444 {offsets = [0, 0], sizes = [2, 16], strides = [1, 1]} : vector<2x48xf32> to vector<2x16xf32>
    %447 = vector.extract_strided_slice %445 {offsets = [0, 0], sizes = [2, 16], strides = [1, 1]} : vector<2x48xf32> to vector<2x16xf32>
    %448 = arith.addf %446, %447 : vector<2x16xf32>
    %449 = arith.negf %448 : vector<2x16xf32>
    %450 = math.exp %449 : vector<2x16xf32>
    %cst_87 = arith.constant 1.000000e+00 : f32
    %451 = vector.broadcast %cst_87 : f32 to vector<2x16xf32>
    %452 = arith.addf %451, %450 : vector<2x16xf32>
    %453 = arith.divf %451, %452 : vector<2x16xf32>
    %454 = vector.extract_strided_slice %444 {offsets = [0, 16], sizes = [2, 16], strides = [1, 1]} : vector<2x48xf32> to vector<2x16xf32>
    %455 = vector.extract_strided_slice %445 {offsets = [0, 16], sizes = [2, 16], strides = [1, 1]} : vector<2x48xf32> to vector<2x16xf32>
    %456 = arith.addf %454, %455 : vector<2x16xf32>
    %457 = arith.negf %456 : vector<2x16xf32>
    %458 = math.exp %457 : vector<2x16xf32>
    %cst_88 = arith.constant 1.000000e+00 : f32
    %459 = vector.broadcast %cst_88 : f32 to vector<2x16xf32>
    %460 = arith.addf %459, %458 : vector<2x16xf32>
    %461 = arith.divf %459, %460 : vector<2x16xf32>
    %462 = vector.extract_strided_slice %444 {offsets = [0, 32], sizes = [2, 16], strides = [1, 1]} : vector<2x48xf32> to vector<2x16xf32>
    %463 = vector.extract_strided_slice %445 {offsets = [0, 32], sizes = [2, 16], strides = [1, 1]} : vector<2x48xf32> to vector<2x16xf32>
    %464 = arith.mulf %453, %463 : vector<2x16xf32>
    %465 = arith.addf %462, %464 : vector<2x16xf32>
    %466 = math.tanh %465 : vector<2x16xf32>
    %cst_89 = arith.constant 1.000000e+00 : f32
    %467 = vector.broadcast %cst_89 : f32 to vector<2x16xf32>
    %468 = arith.subf %467, %461 : vector<2x16xf32>
    %469 = arith.mulf %468, %466 : vector<2x16xf32>
    %470 = arith.mulf %461, %406 : vector<2x16xf32>
    %471 = arith.addf %469, %470 : vector<2x16xf32>
    %472 = vector.extract_strided_slice %73 {offsets = [12, 0], sizes = [2, 48], strides = [1, 1]} : vector<16x48xf32> to vector<2x48xf32>
    %473 = vector.extract_strided_slice %79 {offsets = [12, 0], sizes = [2, 16], strides = [1, 1]} : vector<16x16xf32> to vector<2x16xf32>
    %474 = arith.mulf %473, %438 : vector<2x16xf32>
    %475 = arith.truncf %474 : vector<2x16xf32> to vector<2x16xbf16>
    %cst_90 = arith.constant dense<0.000000e+00> : vector<2x32xf32>
    %476 = tpu.matmul %475, %8, %cst_90 {dimension_numbers = #tpu.dot_dimension_numbers<[1], [0], [0], [1], [0, 0, 1, 1], [], []>} : vector<2x16xbf16>, vector<16x32xbf16>, vector<2x32xf32> -> vector<2x32xf32>
    %477 = vector.extract_strided_slice %472 {offsets = [0, 0], sizes = [2, 16], strides = [1, 1]} : vector<2x48xf32> to vector<2x16xf32>
    %478 = vector.extract_strided_slice %476 {offsets = [0, 0], sizes = [2, 16], strides = [1, 1]} : vector<2x32xf32> to vector<2x16xf32>
    %479 = arith.addf %477, %478 : vector<2x16xf32>
    %480 = arith.negf %479 : vector<2x16xf32>
    %481 = math.exp %480 : vector<2x16xf32>
    %cst_91 = arith.constant 1.000000e+00 : f32
    %482 = vector.broadcast %cst_91 : f32 to vector<2x16xf32>
    %483 = arith.addf %482, %481 : vector<2x16xf32>
    %484 = arith.divf %482, %483 : vector<2x16xf32>
    %485 = vector.extract_strided_slice %472 {offsets = [0, 16], sizes = [2, 16], strides = [1, 1]} : vector<2x48xf32> to vector<2x16xf32>
    %486 = vector.extract_strided_slice %476 {offsets = [0, 16], sizes = [2, 16], strides = [1, 1]} : vector<2x32xf32> to vector<2x16xf32>
    %487 = arith.addf %485, %486 : vector<2x16xf32>
    %488 = arith.negf %487 : vector<2x16xf32>
    %489 = math.exp %488 : vector<2x16xf32>
    %cst_92 = arith.constant 1.000000e+00 : f32
    %490 = vector.broadcast %cst_92 : f32 to vector<2x16xf32>
    %491 = arith.addf %490, %489 : vector<2x16xf32>
    %492 = arith.divf %490, %491 : vector<2x16xf32>
    %493 = arith.mulf %492, %474 : vector<2x16xf32>
    %494 = arith.truncf %493 : vector<2x16xf32> to vector<2x16xbf16>
    %cst_93 = arith.constant dense<0.000000e+00> : vector<2x16xf32>
    %495 = tpu.matmul %494, %10, %cst_93 {dimension_numbers = #tpu.dot_dimension_numbers<[1], [0], [0], [1], [0, 0, 1, 1], [], []>} : vector<2x16xbf16>, vector<16x16xbf16>, vector<2x16xf32> -> vector<2x16xf32>
    %496 = vector.extract_strided_slice %472 {offsets = [0, 32], sizes = [2, 16], strides = [1, 1]} : vector<2x48xf32> to vector<2x16xf32>
    %497 = arith.addf %496, %495 : vector<2x16xf32>
    %498 = math.tanh %497 : vector<2x16xf32>
    %cst_94 = arith.constant 1.000000e+00 : f32
    %499 = vector.broadcast %cst_94 : f32 to vector<2x16xf32>
    %500 = arith.subf %499, %484 : vector<2x16xf32>
    %501 = arith.mulf %500, %474 : vector<2x16xf32>
    %502 = arith.mulf %484, %498 : vector<2x16xf32>
    %503 = arith.addf %501, %502 : vector<2x16xf32>
    %504 = tpu.concatenate %503, %471 in 1 : vector<2x16xf32>, vector<2x16xf32> -> vector<2x32xf32>
    %505 = arith.truncf %504 : vector<2x32xf32> to vector<2x32xbf16>
    %cst_95 = arith.constant dense<0.000000e+00> : vector<2x96xf32>
    %506 = tpu.matmul %505, %12, %cst_95 {dimension_numbers = #tpu.dot_dimension_numbers<[1], [0], [0], [1], [0, 0, 1, 1], [], []>} : vector<2x32xbf16>, vector<32x96xbf16>, vector<2x96xf32> -> vector<2x96xf32>
    %507 = vector.broadcast %25 : vector<1x96xf32> to vector<2x96xf32>
    %508 = arith.addf %506, %507 : vector<2x96xf32>
    %509 = vector.extract_strided_slice %508 {offsets = [0, 0], sizes = [2, 48], strides = [1, 1]} : vector<2x96xf32> to vector<2x48xf32>
    %510 = vector.extract_strided_slice %508 {offsets = [0, 48], sizes = [2, 48], strides = [1, 1]} : vector<2x96xf32> to vector<2x48xf32>
    %511 = vector.extract_strided_slice %509 {offsets = [0, 0], sizes = [2, 16], strides = [1, 1]} : vector<2x48xf32> to vector<2x16xf32>
    %512 = vector.extract_strided_slice %510 {offsets = [0, 0], sizes = [2, 16], strides = [1, 1]} : vector<2x48xf32> to vector<2x16xf32>
    %513 = arith.addf %511, %512 : vector<2x16xf32>
    %514 = arith.negf %513 : vector<2x16xf32>
    %515 = math.exp %514 : vector<2x16xf32>
    %cst_96 = arith.constant 1.000000e+00 : f32
    %516 = vector.broadcast %cst_96 : f32 to vector<2x16xf32>
    %517 = arith.addf %516, %515 : vector<2x16xf32>
    %518 = arith.divf %516, %517 : vector<2x16xf32>
    %519 = vector.extract_strided_slice %509 {offsets = [0, 16], sizes = [2, 16], strides = [1, 1]} : vector<2x48xf32> to vector<2x16xf32>
    %520 = vector.extract_strided_slice %510 {offsets = [0, 16], sizes = [2, 16], strides = [1, 1]} : vector<2x48xf32> to vector<2x16xf32>
    %521 = arith.addf %519, %520 : vector<2x16xf32>
    %522 = arith.negf %521 : vector<2x16xf32>
    %523 = math.exp %522 : vector<2x16xf32>
    %cst_97 = arith.constant 1.000000e+00 : f32
    %524 = vector.broadcast %cst_97 : f32 to vector<2x16xf32>
    %525 = arith.addf %524, %523 : vector<2x16xf32>
    %526 = arith.divf %524, %525 : vector<2x16xf32>
    %527 = vector.extract_strided_slice %509 {offsets = [0, 32], sizes = [2, 16], strides = [1, 1]} : vector<2x48xf32> to vector<2x16xf32>
    %528 = vector.extract_strided_slice %510 {offsets = [0, 32], sizes = [2, 16], strides = [1, 1]} : vector<2x48xf32> to vector<2x16xf32>
    %529 = arith.mulf %518, %528 : vector<2x16xf32>
    %530 = arith.addf %527, %529 : vector<2x16xf32>
    %531 = math.tanh %530 : vector<2x16xf32>
    %cst_98 = arith.constant 1.000000e+00 : f32
    %532 = vector.broadcast %cst_98 : f32 to vector<2x16xf32>
    %533 = arith.subf %532, %526 : vector<2x16xf32>
    %534 = arith.mulf %533, %531 : vector<2x16xf32>
    %535 = arith.mulf %526, %471 : vector<2x16xf32>
    %536 = arith.addf %534, %535 : vector<2x16xf32>
    %537 = vector.extract_strided_slice %73 {offsets = [14, 0], sizes = [2, 48], strides = [1, 1]} : vector<16x48xf32> to vector<2x48xf32>
    %538 = vector.extract_strided_slice %79 {offsets = [14, 0], sizes = [2, 16], strides = [1, 1]} : vector<16x16xf32> to vector<2x16xf32>
    %539 = arith.mulf %538, %503 : vector<2x16xf32>
    %540 = arith.truncf %539 : vector<2x16xf32> to vector<2x16xbf16>
    %cst_99 = arith.constant dense<0.000000e+00> : vector<2x32xf32>
    %541 = tpu.matmul %540, %8, %cst_99 {dimension_numbers = #tpu.dot_dimension_numbers<[1], [0], [0], [1], [0, 0, 1, 1], [], []>} : vector<2x16xbf16>, vector<16x32xbf16>, vector<2x32xf32> -> vector<2x32xf32>
    %542 = vector.extract_strided_slice %537 {offsets = [0, 0], sizes = [2, 16], strides = [1, 1]} : vector<2x48xf32> to vector<2x16xf32>
    %543 = vector.extract_strided_slice %541 {offsets = [0, 0], sizes = [2, 16], strides = [1, 1]} : vector<2x32xf32> to vector<2x16xf32>
    %544 = arith.addf %542, %543 : vector<2x16xf32>
    %545 = arith.negf %544 : vector<2x16xf32>
    %546 = math.exp %545 : vector<2x16xf32>
    %cst_100 = arith.constant 1.000000e+00 : f32
    %547 = vector.broadcast %cst_100 : f32 to vector<2x16xf32>
    %548 = arith.addf %547, %546 : vector<2x16xf32>
    %549 = arith.divf %547, %548 : vector<2x16xf32>
    %550 = vector.extract_strided_slice %537 {offsets = [0, 16], sizes = [2, 16], strides = [1, 1]} : vector<2x48xf32> to vector<2x16xf32>
    %551 = vector.extract_strided_slice %541 {offsets = [0, 16], sizes = [2, 16], strides = [1, 1]} : vector<2x32xf32> to vector<2x16xf32>
    %552 = arith.addf %550, %551 : vector<2x16xf32>
    %553 = arith.negf %552 : vector<2x16xf32>
    %554 = math.exp %553 : vector<2x16xf32>
    %cst_101 = arith.constant 1.000000e+00 : f32
    %555 = vector.broadcast %cst_101 : f32 to vector<2x16xf32>
    %556 = arith.addf %555, %554 : vector<2x16xf32>
    %557 = arith.divf %555, %556 : vector<2x16xf32>
    %558 = arith.mulf %557, %539 : vector<2x16xf32>
    %559 = arith.truncf %558 : vector<2x16xf32> to vector<2x16xbf16>
    %cst_102 = arith.constant dense<0.000000e+00> : vector<2x16xf32>
    %560 = tpu.matmul %559, %10, %cst_102 {dimension_numbers = #tpu.dot_dimension_numbers<[1], [0], [0], [1], [0, 0, 1, 1], [], []>} : vector<2x16xbf16>, vector<16x16xbf16>, vector<2x16xf32> -> vector<2x16xf32>
    %561 = vector.extract_strided_slice %537 {offsets = [0, 32], sizes = [2, 16], strides = [1, 1]} : vector<2x48xf32> to vector<2x16xf32>
    %562 = arith.addf %561, %560 : vector<2x16xf32>
    %563 = math.tanh %562 : vector<2x16xf32>
    %cst_103 = arith.constant 1.000000e+00 : f32
    %564 = vector.broadcast %cst_103 : f32 to vector<2x16xf32>
    %565 = arith.subf %564, %549 : vector<2x16xf32>
    %566 = arith.mulf %565, %539 : vector<2x16xf32>
    %567 = arith.mulf %549, %563 : vector<2x16xf32>
    %568 = arith.addf %566, %567 : vector<2x16xf32>
    %569 = tpu.concatenate %568, %536 in 1 : vector<2x16xf32>, vector<2x16xf32> -> vector<2x32xf32>
    %570 = arith.truncf %569 : vector<2x32xf32> to vector<2x32xbf16>
    %cst_104 = arith.constant dense<0.000000e+00> : vector<2x96xf32>
    %571 = tpu.matmul %570, %12, %cst_104 {dimension_numbers = #tpu.dot_dimension_numbers<[1], [0], [0], [1], [0, 0, 1, 1], [], []>} : vector<2x32xbf16>, vector<32x96xbf16>, vector<2x96xf32> -> vector<2x96xf32>
    %572 = vector.broadcast %25 : vector<1x96xf32> to vector<2x96xf32>
    %573 = arith.addf %571, %572 : vector<2x96xf32>
    %574 = vector.extract_strided_slice %573 {offsets = [0, 0], sizes = [2, 48], strides = [1, 1]} : vector<2x96xf32> to vector<2x48xf32>
    %575 = vector.extract_strided_slice %573 {offsets = [0, 48], sizes = [2, 48], strides = [1, 1]} : vector<2x96xf32> to vector<2x48xf32>
    %576 = vector.extract_strided_slice %574 {offsets = [0, 0], sizes = [2, 16], strides = [1, 1]} : vector<2x48xf32> to vector<2x16xf32>
    %577 = vector.extract_strided_slice %575 {offsets = [0, 0], sizes = [2, 16], strides = [1, 1]} : vector<2x48xf32> to vector<2x16xf32>
    %578 = arith.addf %576, %577 : vector<2x16xf32>
    %579 = arith.negf %578 : vector<2x16xf32>
    %580 = math.exp %579 : vector<2x16xf32>
    %cst_105 = arith.constant 1.000000e+00 : f32
    %581 = vector.broadcast %cst_105 : f32 to vector<2x16xf32>
    %582 = arith.addf %581, %580 : vector<2x16xf32>
    %583 = arith.divf %581, %582 : vector<2x16xf32>
    %584 = vector.extract_strided_slice %574 {offsets = [0, 16], sizes = [2, 16], strides = [1, 1]} : vector<2x48xf32> to vector<2x16xf32>
    %585 = vector.extract_strided_slice %575 {offsets = [0, 16], sizes = [2, 16], strides = [1, 1]} : vector<2x48xf32> to vector<2x16xf32>
    %586 = arith.addf %584, %585 : vector<2x16xf32>
    %587 = arith.negf %586 : vector<2x16xf32>
    %588 = math.exp %587 : vector<2x16xf32>
    %cst_106 = arith.constant 1.000000e+00 : f32
    %589 = vector.broadcast %cst_106 : f32 to vector<2x16xf32>
    %590 = arith.addf %589, %588 : vector<2x16xf32>
    %591 = arith.divf %589, %590 : vector<2x16xf32>
    %592 = vector.extract_strided_slice %574 {offsets = [0, 32], sizes = [2, 16], strides = [1, 1]} : vector<2x48xf32> to vector<2x16xf32>
    %593 = vector.extract_strided_slice %575 {offsets = [0, 32], sizes = [2, 16], strides = [1, 1]} : vector<2x48xf32> to vector<2x16xf32>
    %594 = arith.mulf %583, %593 : vector<2x16xf32>
    %595 = arith.addf %592, %594 : vector<2x16xf32>
    %596 = math.tanh %595 : vector<2x16xf32>
    %cst_107 = arith.constant 1.000000e+00 : f32
    %597 = vector.broadcast %cst_107 : f32 to vector<2x16xf32>
    %598 = arith.subf %597, %591 : vector<2x16xf32>
    %599 = arith.mulf %598, %596 : vector<2x16xf32>
    %600 = arith.mulf %591, %536 : vector<2x16xf32>
    %601 = arith.addf %599, %600 : vector<2x16xf32>
    %602 = arith.truncf %28 : vector<2x10xf32> to vector<2x10xbf16>
    %cst_108 = arith.constant dense<0.000000e+00> : vector<2x16xf32>
    %603 = tpu.matmul %602, %1, %cst_108 {dimension_numbers = #tpu.dot_dimension_numbers<[1], [0], [0], [1], [0, 0, 1, 1], [], []>} : vector<2x10xbf16>, vector<10x16xbf16>, vector<2x16xf32> -> vector<2x16xf32>
    %604 = vector.broadcast %20 : vector<1x16xf32> to vector<2x16xf32>
    %605 = arith.addf %603, %604 : vector<2x16xf32>
    %cst_109 = arith.constant 0.000000e+00 : f32
    %606 = vector.broadcast %cst_109 : f32 to vector<2x16xf32>
    %607 = arith.maximumf %605, %606 : vector<2x16xf32>
    %608 = arith.truncf %607 : vector<2x16xf32> to vector<2x16xbf16>
    %cst_110 = arith.constant dense<0.000000e+00> : vector<2x160xf32>
    %609 = tpu.matmul %608, %15, %cst_110 {dimension_numbers = #tpu.dot_dimension_numbers<[1], [0], [0], [1], [0, 0, 1, 1], [], []>} : vector<2x16xbf16>, vector<16x160xbf16>, vector<2x160xf32> -> vector<2x160xf32>
    %610 = arith.truncf %601 : vector<2x16xf32> to vector<2x16xbf16>
    %cst_111 = arith.constant dense<0.000000e+00> : vector<2x160xf32>
    %611 = tpu.matmul %610, %17, %cst_111 {dimension_numbers = #tpu.dot_dimension_numbers<[1], [0], [0], [1], [0, 0, 1, 1], [], []>} : vector<2x16xbf16>, vector<16x160xbf16>, vector<2x160xf32> -> vector<2x160xf32>
    %612 = arith.addf %609, %611 : vector<2x160xf32>
    %613 = vector.broadcast %26 : vector<1x160xf32> to vector<2x160xf32>
    %614 = arith.addf %612, %613 : vector<2x160xf32>
    %cst_112 = arith.constant 0.000000e+00 : f32
    %615 = vector.broadcast %cst_112 : f32 to vector<2x160xf32>
    %616 = arith.maximumf %614, %615 : vector<2x160xf32>
    %617 = arith.truncf %616 : vector<2x160xf32> to vector<2x160xbf16>
    %cst_113 = arith.constant dense<0.000000e+00> : vector<2x20xf32>
    %618 = tpu.matmul %617, %19, %cst_113 {dimension_numbers = #tpu.dot_dimension_numbers<[1], [0], [0], [1], [0, 0, 1, 1], [], []>} : vector<2x160xbf16>, vector<160x20xbf16>, vector<2x20xf32> -> vector<2x20xf32>
    %619 = vector.broadcast %27 : vector<1x20xf32> to vector<2x20xf32>
    %620 = arith.addf %618, %619 : vector<2x20xf32>
    %621 = tpu.concatenate %616, %620 in 1 : vector<2x160xf32>, vector<2x20xf32> -> vector<2x180xf32>
    %c0_114 = arith.constant 0 : index
    %c0_115 = arith.constant 0 : index
    %622 = vector.load %arg4[%c0_114, %c0_115] : memref<2x180xf32, #tpu.memory_space<vmem>>, vector<2x180xf32>
    tpu.vector_store %arg4[%c0_114, %c0_115], %621 {strides = array<i32>} : memref<2x180xf32, #tpu.memory_space<vmem>>, vector<2x180xf32>,
    return
  }
}

</mosaic_0001>

<bundles_post_ra>
// kernel: forward.1
= control target key start
LH: loop header
LB: loop body
LE: loop exit
PB: predicated region body
PF: predicated region fallthrough
CT: control target
= control target key end

     0   :  { %v2652_v0 = vmov 0.0   ;;  %vm96_vm0 = vcmask 1042432   ;;  %vm2653_vm1 = vmmov 0   ;;  %vm92_vm2 = vcmask 48128   ;;  %s2654_s22 = smov 12   ;;  %s2655_s23 = smov 122   ;;  %s3232_s2 = inlined_call_operand.vmem [shape: f32[288,160], index: 2, kind: input, shape index: {}]   ;;  %s3233_s1 = inlined_call_operand.vmem [shape: f32[16,24], index: 1, kind: input, shape index: {}]   ;;  %s3234_s3 = inlined_call_operand.vmem [shape: f32[8,160], index: 3, kind: input, shape index: {}]   ;;  %s3235_s0 = inlined_call_operand.vmem [shape: f32[2,16], index: 0, kind: input, shape index: {}]   ;;  %s3236_s4 = inlined_call_operand.vmem [shape: f32[2,180], index: 4, kind: output, shape index: {}]  }
   0x1   :  { %2340 = vmatprep.subr.bf16.mxu0 %v2652_v0  ;;  %v21_v1 = vld [vmem:[%s3232_s2 + $0x20] sm:$0x3f]  ;;  %2342 = vmatprep.mubr.msk.bf16.mxu0 %vm2653_vm1, %v2652_v0  ;;  %v2704_v3 = vld [vmem:[%s3233_s1 + $0x8] sm:$0xff]  ;;  %vm172_vm3 = vcmask 1041408   ;;  %vm174_vm4 = vcmask 1043456   ;;  %vm176_vm5 = vcmask 1045504  }
   0x2   :  { %v2699_v2 = vld [vmem:[%s3233_s1] sm:$0xff]  ;;  %v22_v4 = vpack.c.bf16 %v21_v1, %v21_v1  ;;  %2374 = vmatprep.subr.bf16.mxu1 %v2652_v0  ;;  %2376 = vmatprep.mubr.msk.bf16.mxu1 %vm2653_vm1, %v2652_v0  ;;  %s2656_s30 = smov 2   ;;  %s2657_s5 = smov 6   ;;  %v23_v63 = vld [vmem:[%s3232_s2 + $0x30] sm:$0xff]  ;;  %vm260_vm6 = vcmask 1040384   ;;  %vm252_vm7 = vcmask 97280  }
   0x3   :  { %v91_v6 = vpack.c.bf16 %v2704_v3, %v2699_v2  ;;  %v82_v7 = vld [vmem:[%s3234_s3 + $0x3] ss:$0 sm:$0xff]  ;;  %v80_v8 = vld [vmem:[%s3234_s3 + $0x1] ss:$0 sm:$0xff]  ;;  %v81_v21 = vld [vmem:[%s3234_s3 + $0x2] ss:$0 sm:$0xff] }
   0x4   :  { %v98_v5 = vsel %vm96_vm0, %v22_v4, 0  ;;  %185 = vrot.lane.b32.xlu1 %v82_v7, %s2654_s22  ;;  %v88_v17 = vld [vmem:[%s3235_s0] sm:$0x3]  ;;  %vm256_vm8 = vcmask 146432   ;;  %s2658_s18 = smov 96   ;;  %s2659_s19 = smov 80  }
   0x5   :  { %2341 = vmatpush3.bf16.msra.mxu0 %v98_v5  ;;  %v166_v18 = vrot.slane %v88_v17, 6  ;;  %v168_v19 = vrot.slane %v88_v17, 4  ;;  %v170_v22 = vrot.slane %v88_v17, 2  ;;  %v24_v1 = vld [vmem:[%s3232_s2 + $0x40] sm:$0xff]  ;;  %vm318_vm9 = vcmask 130048   ;;  %s2660_s20 = smov 112  }
   0x6   :  { %2346 = vmatprep.subr.bf16.mxu0 %v2652_v0  ;;  %v26_v7 = vpack.c.bf16 %v24_v1, %v23_v63  ;;  %s2661_s1 = smov 32   ;;  %vm444_vm10 = vcmask 261120   ;;  %s2662_s29 = smov 48   ;;  %vm2009_vm11 = vcmask 1044480   ;;  %vm2005_vm12 = vcmask 80896  }
   0x7   :  { %v173_v20 = vsel %vm172_vm3, %v88_v17, %v166_v18  ;;  %v209_v17 = vsub.f32 1.0, %v2704_v3  ;;  %vm2223_vm13 = vcmask 420866  }
   0x8   :  { %2343 = vmatmul.mubr.msk.bf16.vlgmr.msra.gmra.mrb[0].mxu0 %vm92_vm2, %v91_v6  ;;  %212 = vrot.lane.b32.xlu1 %v2699_v2, %s2655_s23  ;;  %v175_v23 = vsel %vm174_vm4, %v173_v20, %v168_v19  ;;  %vm2224_vm14 = vmor %vm2223_vm13, %vm172_vm3 }
   0x9   :  { %2350 = vmatprep.mubr.msk.bf16.mxu0 %vm2653_vm1, %v2652_v0  ;;  %v177_v24 = vsel %vm176_vm5, %v175_v23, %v170_v22  ;;  %2347 = vmatpush3.bf16.msra.mxu0 %v26_v7 }
   0xa   :  { %2348 = vmatprep.subr.bf16.mxu0 %v2652_v0 }
  0x76   :  { %v186_v37 = vpop.permute.xlu1 %185 }
  0x7a   :  { %v213_v46 = vpop.permute.xlu1 %212 }
  0xdb   :  { %v134_v9 = vpop.f32.mrb[0].mxu0 }
  0xdc   :  { %v135_v10 = vadd.f32 %v134_v9, %v80_v8  ;;  %v2344_v11 = vpop.f32.mrb[1].mxu0 }
  0xdd   :  { %v137_v12 = vpop.f32.mrb[2].mxu0  ;;  %v25_v11 = vld [vmem:[%s3232_s2 + $0x50] sm:$0x3] }
  0xde   :  { %v138_v13 = vadd.f32 %v137_v12, %v80_v8  ;;  %v2345_v14 = vpop.f32.mrb[3].mxu0  ;;  %v141_v15 = vsel %vm92_vm2, %v135_v10, -inf  ;;  %v27_v12 = vpack.c.bf16 %v25_v11, %v25_v11  ;;  %v33_v11 = vld [vmem:[%s3232_s2 + $0xa0] sm:$0xff] }
  0xdf   :  { %142 = vmax.xlane.f32.xlu0 %v141_v15 }
  0xe0   :  { %v144_v16 = vsel %vm92_vm2, %v138_v13, -inf }
  0xe3   :  { %145 = vmax.xlane.f32.xlu0 %v144_v16  ;;  %v262_v16 = vsel %vm260_vm6, %v27_v12, 0  ;;  %v34_v12 = vld [vmem:[%s3232_s2 + $0xb0] sm:$0xff] }
  0xe4   :  { %2349 = vmatpush3.bf16.msra.mxu0 %v262_v16 }
  0xe5   :  { %2354 = vmatprep.subr.bf16.mxu0 %v2652_v0 }
  0xf9   :  { %179 = vrot.lane.b32.xlu0 %v81_v21, %s2654_s22 }
  0xfd   :  { %223 = vrot.lane.b32.xlu0 %v177_v24, %s2656_s30 }
 0x16c   :  { %v143_v25 = vpop.xlane.xlu0 %142 }
 0x16d   :  { %v147_v26 = vsub.f32 %v135_v10, %v143_v25 }
 0x16f   :  { %v149_v27 = vmul.f32 1.442695, %v147_v26 }
 0x170   :  { %v146_v28 = vpop.xlane.xlu0 %145 }
 0x171   :  { %2538 = vpow2.f32 %v149_v27  ;;  %v148_v29 = vsub.f32 %v138_v13, %v146_v28  ;;  %v208_v13 = vsub.f32 1.0, %v2699_v2 }
 0x173   :  { %v151_v30 = vmul.f32 1.442695, %v148_v29 }
 0x174   :  { %v180_v35 = vpop.permute.xlu0 %179 }
 0x175   :  { %2540 = vpow2.f32 %v151_v30  ;;  %v182_v36 = vmul.f32 %v180_v35, %v2699_v2  ;;  %v183_v39 = vmul.f32 %v180_v35, %v2704_v3  ;;  %v29_v35 = vld [vmem:[%s3232_s2 + $0x70] sm:$0xff] }
 0x177   :  { %v188_v38 = vadd.f32 %v186_v37, %v182_v36  ;;  %v189_v41 = vadd.f32 %v186_v37, %v183_v39 }
 0x178   :  { %v224_v53 = vpop.permute.xlu0 %223 }
 0x179   :  { %v190_v40 = vmax.f32 %v188_v38, 0.0  ;;  %v191_v43 = vmax.f32 %v189_v41, 0.0 }
 0x17b   :  { %v2539_v31 = vpop.eup %2538  ;;  %v192_v42 = vsub.f32 0.0, %v190_v40  ;;  %v193_v45 = vsub.f32 0.0, %v191_v43 }
 0x17c   :  { %v153_v32 = vsel %vm92_vm2, %v2539_v31, 0.0 }
 0x17d   :  { %154 = vadd.xlane.f32.xlu1 %v153_v32  ;;  %v194_v44 = vmul.f32 1.442695, %v192_v42  ;;  %v196_v47 = vmul.f32 1.442695, %v193_v45 }
 0x17f   :  { %v2541_v33 = vpop.eup %2540  ;;  %2542 = vpow2.f32 %v194_v44 }
 0x180   :  { %v156_v34 = vsel %vm92_vm2, %v2541_v33, 0.0 }
 0x181   :  { %157 = vadd.xlane.f32.xlu1 %v156_v34  ;;  %v28_v34 = vld [vmem:[%s3232_s2 + $0x60] sm:$0xff] }
 0x182   :  { %v2772_v36 = vpack.c.bf16 %v29_v35, %v28_v34 }
 0x184   :  { %2375 = vmatpush3.bf16.msra.mxu1 %v2772_v36 }
 0x185   :  { %2386 = vmatprep.subr.bf16.mxu1 %v2652_v0 }
 0x189   :  { %v2543_v50 = vpop.eup %2542 }
 0x18a   :  { %v220_v51 = vsub.f32 1.0, %v2543_v50  ;;  %v218_v56 = vmul.f32 %v2543_v50, %v213_v46 }
 0x18c   :  { %v226_v57 = vmul.f32 %v224_v53, %v220_v51 }
 0x18e   :  { %v228_v4 = vadd.f32 %v226_v57, %v218_v56 }
 0x192   :  { %214 = vrot.lane.b32.xlu1 %v2704_v3, %s2655_s23 }
 0x20a   :  { %v155_v48 = vpop.xlane.xlu1 %154 }
 0x20b   :  { %2544 = vrcp.f32 %v155_v48 }
 0x20c   :  { %2546 = vpow2.f32 %v196_v47 }
 0x20e   :  { %v158_v49 = vpop.xlane.xlu1 %157 }
 0x20f   :  { %2548 = vrcp.f32 %v158_v49 }
 0x212   :  { %v215_v60 = vpop.permute.xlu1 %214 }
 0x215   :  { %v2545_v52 = vpop.eup %2544 }
 0x216   :  { %v160_v54 = vmul.f32 %v2545_v52, %v2539_v31  ;;  %v2547_v55 = vpop.eup %2546 }
 0x217   :  { %v221_v61 = vsub.f32 1.0, %v2547_v55  ;;  %v219_v5 = vmul.f32 %v2547_v55, %v215_v60 }
 0x218   :  { %v163_v58 = vmul.f32 %v160_v54, %v2699_v2 }
 0x219   :  { %v2549_v59 = vpop.eup %2548  ;;  %v227_v8 = vmul.f32 %v224_v53, %v221_v61 }
 0x21a   :  { %200 = vrot.lane.b32.xlu1 %v163_v58, %s2657_s5  ;;  %v162_v62 = vmul.f32 %v2549_v59, %v2541_v33 }
 0x21b   :  { %v229_v9 = vadd.f32 %v227_v8, %v219_v5  ;;  %v32_v5 = vld [vmem:[%s3232_s2 + $0x90] sm:$0xff] }
 0x21c   :  { %v164_v6 = vmul.f32 %v162_v62, %v2704_v3 }
 0x21e   :  { %202 = vrot.lane.b32.xlu0 %v164_v6, %s2657_s5  ;;  %232 = vrot.lane.b32.xlu1 %v228_v4, %s2655_s23  ;;  %v31_v4 = vld [vmem:[%s3232_s2 + $0x80] sm:$0xff] }
 0x21f   :  { %v2813_v7 = vpack.c.bf16 %v32_v5, %v31_v4  ;;  %v2860_v5 = vld [vmem:[%s3234_s3 + $0x5] ss:$0 sm:$0xff] }
 0x222   :  { %234 = vrot.lane.b32.xlu0 %v229_v9, %s2655_s23 }
 0x28c   :  { %v201_v10 = vpop.permute.xlu1 %200 }
 0x28d   :  { %v206_v20 = vmul.f32 %v201_v10, %v2699_v2 }
 0x290   :  { %v233_v14 = vpop.permute.xlu1 %232  ;;  %v203_v15 = vpop.permute.xlu0 %202 }
 0x291   :  { %v238_v18 = vmul.f32 %v233_v14, %v208_v13  ;;  %v207_v21 = vmul.f32 %v203_v15, %v2704_v3  ;;  %v2824_v13 = vpack.c.bf16 %v34_v12, %v33_v11 }
 0x293   :  { %v240_v23 = vadd.f32 %v238_v18, %v206_v20 }
 0x294   :  { %v235_v19 = vpop.permute.xlu0 %234 }
 0x295   :  { %v239_v22 = vmul.f32 %v235_v19, %v209_v17 }
 0x297   :  { %v241_v24 = vadd.f32 %v239_v22, %v207_v21 }
 0x299   :  { %v2533_v25 = vpack.i.bf16 %v241_v24, %v240_v23 }
 0x29b   :  { %2534 = vrot.lane.b32.xlu1 %v2533_v25, %s2655_s23 }
 0x30d   :  { %v2535_v26 = vpop.permute.xlu1 %2534 }
 0x30e   :  { %v2537_v27 = vunpack.i.h.bf16 %v2535_v26  ;;  %v2536_v28 = vunpack.i.l.bf16 %v2535_v26 }
 0x310   :  { %v251_v29 = vsel %vm92_vm2, %v2537_v27, %v2704_v3  ;;  %v250_v30 = vsel %vm92_vm2, %v2536_v28, %v2699_v2 }
 0x311   :  { %v254_v31 = vsel %vm252_vm7, %v251_v29, %v2704_v3  ;;  %v253_v32 = vsel %vm252_vm7, %v250_v30, %v2699_v2  ;;  %v83_v2 = vld [vmem:[%s3234_s3 + $0x4] ss:$0 sm:$0xff] }
 0x312   :  { %v255_v33 = vpack.c.bf16 %v254_v31, %v253_v32 }
 0x314   :  { %2351 = vmatmul.mubr.msk.bf16.vlgmr.msra.gmra.mrb[4].mxu0 %vm256_vm8, %v255_v33 }
 0x315   :  { %2356 = vmatprep.mubr.msk.bf16.mxu0 %vm2653_vm1, %v2652_v0  ;;  %2355 = vmatpush3.bf16.msra.mxu0 %v2772_v36 }
 0x316   :  { %2360 = vmatprep.subr.bf16.mxu0 %v2652_v0 }
 0x3e7   :  { %v298_v3 = vpop.f32.mrb[4].mxu0 }
 0x3e8   :  { %v2781_v37 = vadd.f32 %v298_v3, %v83_v2  ;;  %v2352_v38 = vpop.f32.mrb[5].mxu0 }
 0x3e9   :  { %v301_v39 = vpop.f32.mrb[6].mxu0 }
 0x3ea   :  { %v305_v40 = vmax.f32 %v2781_v37, 0.0  ;;  %v2784_v41 = vadd.f32 %v301_v39, %v83_v2  ;;  %v2353_v42 = vpop.f32.mrb[7].mxu0 }
 0x3ec   :  { %v307_v43 = vsub.f32 0.0, %v305_v40 }
 0x3ee   :  { %v309_v44 = vmul.f32 1.442695, %v307_v43 }
 0x3f0   :  { %2550 = vpow2.f32 %v309_v44 }
 0x3fa   :  { %v2786_v45 = vpop.eup %2550 }
 0x3fb   :  { %v313_v46 = vmul.f32 0.0, %v2786_v45 }
 0x3fd   :  { %370 = vrot.lane.b32.xlu1 %v313_v46, %s2658_s18  ;;  %v314_v47 = vpack.c.bf16 %v313_v46, %v313_v46 }
 0x3ff   :  { %316 = vrot.lane.b32.xlu0 %v314_v47, %s2659_s19 }
 0x403   :  { %379 = vrot.lane.b32.xlu0 %v2772_v36, %s2658_s18 }
 0x46f   :  { %v371_v59 = vpop.permute.xlu1 %370 }
 0x471   :  { %v317_v48 = vpop.permute.xlu0 %316 }
 0x472   :  { %2357 = vmatmul.mubr.msk.bf16.vlgmr.msra.gmra.mrb[8].mxu0 %vm318_vm9, %v317_v48 }
 0x473   :  { %2362 = vmatprep.mubr.msk.bf16.mxu0 %vm2653_vm1, %v2652_v0 }
 0x475   :  { %v2796_v49 = vpop.permute.xlu0 %379 }
 0x476   :  { %2361 = vmatpush3.bf16.msra.mxu0 %v2796_v49 }
 0x477   :  { %2366 = vmatprep.subr.bf16.mxu0 %v2652_v0 }
 0x545   :  { %v356_v50 = vpop.f32.mrb[8].mxu0 }
 0x546   :  { %v362_v51 = vadd.f32 %v356_v50, %v2781_v37  ;;  %v2358_v52 = vpop.f32.mrb[9].mxu0 }
 0x547   :  { %v359_v53 = vpop.f32.mrb[10].mxu0 }
 0x548   :  { %v2234_v54 = vmul.f32 -1.442695, %v362_v51  ;;  %v2359_v55 = vpop.f32.mrb[11].mxu0 }
 0x54a   :  { %2552 = vpow2.f32 %v2234_v54 }
 0x554   :  { %v2553_v56 = vpop.eup %2552 }
 0x555   :  { %v366_v57 = vadd.f32 1.0, %v2553_v56 }
 0x557   :  { %2554 = vrcp.f32 %v366_v57 }
 0x561   :  { %v2555_v58 = vpop.eup %2554 }
 0x562   :  { %v373_v60 = vmul.f32 %v2555_v58, %v371_v59  ;;  %v431_v16 = vsub.f32 1.0, %v2555_v58 }
 0x564   :  { %v374_v61 = vpack.c.bf16 %v373_v60, %v373_v60 }
 0x566   :  { %376 = vrot.lane.b32.xlu1 %v374_v61, %s2660_s20 }
 0x56a   :  { %432 = vrot.lane.b32.xlu1 %v313_v46, %s2659_s19 }
 0x5d8   :  { %v377_v62 = vpop.permute.xlu1 %376 }
 0x5d9   :  { %2363 = vmatmul.mubr.msk.bf16.vlgmr.msra.gmra.mrb[12].mxu0 %vm318_vm9, %v377_v62 }
 0x5da   :  { %2370 = vmatprep.mubr.msk.bf16.mxu0 %vm2653_vm1, %v2652_v0  ;;  %2367 = vmatpush3.bf16.msra.mxu0 %v2813_v7 }
 0x5db   :  { %2368 = vmatprep.subr.bf16.mxu0 %v2652_v0 }
 0x5dc   :  { %v433_v15 = vpop.permute.xlu1 %432 }
 0x5dd   :  { %v435_v18 = vmul.f32 %v433_v15, %v431_v16 }
 0x5de   :  { %2369 = vmatpush3.bf16.msra.mxu0 %v2824_v13 }
 0x5df   :  { %2380 = vmatprep.subr.bf16.mxu0 %v2652_v0 }
 0x6ac   :  { %v419_v63 = vpop.f32.mrb[12].mxu0 }
 0x6ad   :  { %426 = vrot.lane.b32.xlu0 %v419_v63, %s2661_s1  ;;  %v2364_v1 = vpop.f32.mrb[13].mxu0 }
 0x6ae   :  { %v422_v6 = vpop.f32.mrb[14].mxu0 }
 0x6af   :  { %v2365_v8 = vpop.f32.mrb[15].mxu0 }
 0x71f   :  { %v427_v9 = vpop.permute.xlu0 %426 }
 0x720   :  { %v429_v10 = vadd.f32 %v427_v9, %v2781_v37 }
 0x722   :  { %2556 = vtanh.f32 %v429_v10 }
 0x72c   :  { %v2557_v14 = vpop.eup %2556 }
 0x72d   :  { %437 = vrot.lane.b32.xlu0 %v2557_v14, %s2658_s18 }
 0x79f   :  { %v438_v17 = vpop.permute.xlu0 %437 }
 0x7a0   :  { %v440_v19 = vmul.f32 %v2555_v58, %v438_v17 }
 0x7a2   :  { %v441_v20 = vadd.f32 %v440_v19, %v435_v18 }
 0x7a4   :  { %v442_v21 = vsel %vm318_vm9, %v441_v20, 0.0  ;;  %v518_v22 = vrot.slane %v441_v20, 6 }
 0x7a5   :  { %v443_v23 = vpack.c.bf16 %v442_v21, %v442_v21 }
 0x7a6   :  { %519 = vrot.lane.b32.xlu1 %v518_v22, %s2662_s29 }
 0x7a7   :  { %2371 = vmatmul.mubr.msk.bf16.vlgmr.msra.gmra.mrb[16].mxu0 %vm444_vm10, %v443_v23 }
 0x7a8   :  { %2381 = vmatpush3.bf16.msra.mxu0 %v2796_v49  ;;  %2382 = vmatprep.mubr.msk.bf16.mxu0 %vm2653_vm1, %v2652_v0 }
 0x7a9   :  { %2394 = vmatprep.subr.bf16.mxu0 %v2652_v0 }
 0x818   :  { %v520_v24 = vpop.permute.xlu1 %519 }
 0x819   :  { %v522_v25 = vmul.f32 %v2786_v45, %v520_v24 }
 0x81b   :  { %582 = vrot.lane.b32.xlu1 %v522_v25, %s2658_s18  ;;  %v523_v26 = vpack.c.bf16 %v522_v25, %v522_v25 }
 0x81d   :  { %v525_v27 = vrot.slane %v523_v26, 1 }
 0x81f   :  { %526 = vrot.lane.b32.xlu0 %v525_v27, %s2659_s19 }
 0x87a   :  { %v482_v28 = vpop.f32.mrb[16].mxu0 }
 0x87b   :  { %v2372_v29 = vpop.f32.mrb[17].mxu0  ;;  %v483_v6 = vadd.f32 %v482_v28, %v2860_v5 }
 0x87c   :  { %v485_v30 = vpop.f32.mrb[18].mxu0 }
 0x87d   :  { %v2373_v31 = vpop.f32.mrb[19].mxu0 }
 0x88d   :  { %v583_v44 = vpop.permute.xlu1 %582 }
 0x891   :  { %v527_v32 = vpop.permute.xlu0 %526 }
 0x892   :  { %2377 = vmatmul.mubr.msk.bf16.vlgmr.msra.gmra.mrb[0].mxu1 %vm318_vm9, %v527_v32 }
 0x893   :  { %2387 = vmatpush3.bf16.msra.mxu1 %v2813_v7  ;;  %2390 = vmatprep.mubr.msk.bf16.mxu1 %vm2653_vm1, %v2652_v0 }
 0x894   :  { %2388 = vmatprep.subr.bf16.mxu1 %v2652_v0 }
 0x897   :  { %2389 = vmatpush3.bf16.msra.mxu1 %v2824_v13 }
 0x898   :  { %2400 = vmatprep.subr.bf16.mxu1 %v2652_v0 }
 0x965   :  { %v565_v33 = vpop.f32.mrb[0].mxu1 }
 0x966   :  { %v572_v34 = vrot.slane %v565_v33, 6  ;;  %v2378_v35 = vpop.f32.mrb[1].mxu1 }
 0x967   :  { %v568_v2 = vpop.f32.mrb[2].mxu1 }
 0x968   :  { %v574_v3 = vadd.f32 %v572_v34, %v2781_v37  ;;  %v2379_v38 = vpop.f32.mrb[3].mxu1 }
 0x96a   :  { %v2239_v39 = vmul.f32 -1.442695, %v574_v3 }
 0x96c   :  { %2558 = vpow2.f32 %v2239_v39 }
 0x976   :  { %v2559_v40 = vpop.eup %2558 }
 0x977   :  { %v578_v42 = vadd.f32 1.0, %v2559_v40 }
 0x979   :  { %2560 = vrcp.f32 %v578_v42 }
 0x983   :  { %v2561_v43 = vpop.eup %2560 }
 0x984   :  { %v585_v46 = vmul.f32 %v2561_v43, %v583_v44  ;;  %v641_v60 = vsub.f32 1.0, %v2561_v43 }
 0x986   :  { %v586_v47 = vpack.c.bf16 %v585_v46, %v585_v46 }
 0x988   :  { %v588_v48 = vrot.slane %v586_v47, 1 }
 0x98a   :  { %589 = vrot.lane.b32.xlu0 %v588_v48, %s2660_s20 }
 0x98e   :  { %642 = vrot.lane.b32.xlu0 %v522_v25, %s2659_s19 }
 0x9fc   :  { %v590_v50 = vpop.permute.xlu0 %589 }
 0x9fd   :  { %2383 = vmatmul.mubr.msk.bf16.vlgmr.msra.gmra.mrb[20].mxu0 %vm318_vm9, %v590_v50 }
 0x9fe   :  { %2395 = vmatpush3.bf16.msra.mxu0 %v2772_v36  ;;  %2396 = vmatprep.mubr.msk.bf16.mxu0 %vm2653_vm1, %v2652_v0 }
 0x9ff   :  { %2406 = vmatprep.subr.bf16.mxu0 %v2652_v0 }
 0xa00   :  { %v643_v59 = vpop.permute.xlu0 %642 }
 0xa01   :  { %v645_v62 = vmul.f32 %v643_v59, %v641_v60 }
 0xad0   :  { %v628_v51 = vpop.f32.mrb[20].mxu0 }
 0xad1   :  { %v635_v52 = vrot.slane %v628_v51, 6  ;;  %v2384_v53 = vpop.f32.mrb[21].mxu0 }
 0xad2   :  { %v631_v54 = vpop.f32.mrb[22].mxu0 }
 0xad3   :  { %636 = vrot.lane.b32.xlu1 %v635_v52, %s2661_s1  ;;  %v2385_v55 = vpop.f32.mrb[23].mxu0 }
 0xb45   :  { %v637_v56 = vpop.permute.xlu1 %636 }
 0xb46   :  { %v639_v57 = vadd.f32 %v637_v56, %v2781_v37 }
 0xb48   :  { %2562 = vtanh.f32 %v639_v57 }
 0xb52   :  { %v2563_v58 = vpop.eup %2562 }
 0xb53   :  { %647 = vrot.lane.b32.xlu1 %v2563_v58, %s2658_s18 }
 0xbc5   :  { %v648_v61 = vpop.permute.xlu1 %647 }
 0xbc6   :  { %v650_v63 = vmul.f32 %v2561_v43, %v648_v61 }
 0xbc8   :  { %v651_v1 = vadd.f32 %v650_v63, %v645_v62 }
 0xbca   :  { %v732_v4 = vrot.slane %v651_v1, 6 }
 0xbcc   :  { %733 = vrot.lane.b32.xlu0 %v732_v4, %s2662_s29 }
 0xbd0   :  { %489 = vrot.lane.b32.xlu0 %v483_v6, %s2659_s19 }
 0xc3e   :  { %v734_v8 = vpop.permute.xlu0 %733 }
 0xc3f   :  { %v736_v9 = vmul.f32 %v2786_v45, %v734_v8 }
 0xc41   :  { %v737_v10 = vpack.c.bf16 %v736_v9, %v736_v9 }
 0xc42   :  { %v490_v12 = vpop.permute.xlu0 %489 }
 0xc43   :  { %v739_v11 = vrot.slane %v737_v10, 2  ;;  %v492_v14 = vadd.f32 %v490_v12, %v483_v6 }
 0xc45   :  { %740 = vrot.lane.b32.xlu1 %v739_v11, %s2659_s19  ;;  %v2237_v15 = vmul.f32 -1.442695, %v492_v14 }
 0xc47   :  { %2564 = vpow2.f32 %v2237_v15 }
 0xc49   :  { %499 = vrot.lane.b32.xlu1 %v483_v6, %s2662_s29 }
 0xc4d   :  { %796 = vrot.lane.b32.xlu1 %v736_v9, %s2658_s18 }
 0xc51   :  { %v2565_v16 = vpop.eup %2564 }
 0xc52   :  { %v496_v17 = vadd.f32 1.0, %v2565_v16 }
 0xc54   :  { %2566 = vrcp.f32 %v496_v17 }
 0xc5e   :  { %v2567_v19 = vpop.eup %2566 }
 0xc5f   :  { %v509_v39 = vsub.f32 1.0, %v2567_v19  ;;  %v515_v42 = vmul.f32 0.0, %v2567_v19 }
 0xcb7   :  { %v741_v18 = vpop.permute.xlu1 %740 }
 0xcb8   :  { %2397 = vmatmul.mubr.msk.bf16.vlgmr.msra.gmra.mrb[24].mxu0 %vm318_vm9, %v741_v18 }
 0xcb9   :  { %2407 = vmatpush3.bf16.msra.mxu0 %v2813_v7  ;;  %2410 = vmatprep.mubr.msk.bf16.mxu0 %vm2653_vm1, %v2652_v0 }
 0xcba   :  { %2408 = vmatprep.subr.bf16.mxu0 %v2652_v0 }
 0xcbb   :  { %v500_v20 = vpop.permute.xlu1 %499 }
 0xcbc   :  { %v502_v21 = vmul.f32 %v2567_v19, %v500_v20 }
 0xcbd   :  { %2409 = vmatpush3.bf16.msra.mxu0 %v2824_v13 }
 0xcbe   :  { %504 = vrot.lane.b32.xlu0 %v502_v21, %s2661_s1  ;;  %2420 = vmatprep.subr.bf16.mxu0 %v2652_v0 }
 0xcbf   :  { %v797_v35 = vpop.permute.xlu1 %796 }
 0xd30   :  { %v505_v22 = vpop.permute.xlu0 %504 }
 0xd31   :  { %v507_v23 = vadd.f32 %v505_v22, %v483_v6 }
 0xd33   :  { %2568 = vtanh.f32 %v507_v23 }
 0xd3d   :  { %v2569_v24 = vpop.eup %2568 }
 0xd3e   :  { %511 = vrot.lane.b32.xlu0 %v2569_v24, %s2660_s20 }
 0xd8b   :  { %v779_v25 = vpop.f32.mrb[24].mxu0 }
 0xd8c   :  { %v786_v26 = vrot.slane %v779_v25, 4  ;;  %v2398_v27 = vpop.f32.mrb[25].mxu0 }
 0xd8d   :  { %v782_v28 = vpop.f32.mrb[26].mxu0 }
 0xd8e   :  { %v788_v29 = vadd.f32 %v786_v26, %v2781_v37  ;;  %v2399_v30 = vpop.f32.mrb[27].mxu0 }
 0xd90   :  { %v2244_v31 = vmul.f32 -1.442695, %v788_v29 }
 0xd92   :  { %2570 = vpow2.f32 %v2244_v31 }
 0xd9c   :  { %v2571_v32 = vpop.eup %2570 }
 0xd9d   :  { %v792_v33 = vadd.f32 1.0, %v2571_v32 }
 0xd9f   :  { %2572 = vrcp.f32 %v792_v33 }
 0xda9   :  { %v2573_v34 = vpop.eup %2572 }
 0xdaa   :  { %v799_v2 = vmul.f32 %v2573_v34, %v797_v35  ;;  %v855_v4 = vsub.f32 1.0, %v2573_v34 }
 0xdac   :  { %v800_v3 = vpack.c.bf16 %v799_v2, %v799_v2 }
 0xdae   :  { %v802_v38 = vrot.slane %v800_v3, 2 }
 0xdb0   :  { %v512_v40 = vpop.permute.xlu0 %511  ;;  %803 = vrot.lane.b32.xlu1 %v802_v38, %s2660_s20 }
 0xdb1   :  { %v514_v43 = vmul.f32 %v512_v40, %v509_v39 }
 0xdb3   :  { %v2880_v44 = vadd.f32 %v515_v42, %v514_v43 }
 0xdb4   :  { %856 = vrot.lane.b32.xlu1 %v736_v9, %s2659_s19 }
 0xdb5   :  { %v653_v46 = vrot.slane %v2880_v44, 6 }
 0xdb7   :  { %v655_v47 = vsel %vm318_vm9, %v651_v1, %v653_v46 }
 0xdb8   :  { %v656_v48 = vpack.c.bf16 %v655_v47, %v655_v47 }
 0xdba   :  { %v658_v50 = vrot.slane %v656_v48, 1 }
 0xdbc   :  { %2391 = vmatmul.mubr.msk.bf16.vlgmr.msra.gmra.mrb[4].mxu1 %vm444_vm10, %v658_v50 }
 0xdbd   :  { %2401 = vmatpush3.bf16.msra.mxu1 %v2796_v49  ;;  %2402 = vmatprep.mubr.msk.bf16.mxu1 %vm2653_vm1, %v2652_v0 }
 0xdbe   :  { %2414 = vmatprep.subr.bf16.mxu1 %v2652_v0 }
 0xe22   :  { %v804_v51 = vpop.permute.xlu1 %803 }
 0xe23   :  { %2403 = vmatmul.mubr.msk.bf16.vlgmr.msra.gmra.mrb[8].mxu1 %vm318_vm9, %v804_v51 }
 0xe24   :  { %2415 = vmatpush3.bf16.msra.mxu1 %v2772_v36  ;;  %2416 = vmatprep.mubr.msk.bf16.mxu1 %vm2653_vm1, %v2652_v0 }
 0xe25   :  { %2426 = vmatprep.subr.bf16.mxu1 %v2652_v0 }
 0xe26   :  { %v857_v1 = vpop.permute.xlu1 %856 }
 0xe27   :  { %v859_v8 = vmul.f32 %v857_v1, %v855_v4 }
 0xe8f   :  { %v696_v52 = vpop.f32.mrb[4].mxu1 }
 0xe90   :  { %v2392_v53 = vpop.f32.mrb[5].mxu1  ;;  %v697_v12 = vadd.f32 %v696_v52, %v2860_v5 }
 0xe91   :  { %v699_v54 = vpop.f32.mrb[6].mxu1 }
 0xe92   :  { %v2393_v55 = vpop.f32.mrb[7].mxu1 }
 0xef6   :  { %v842_v56 = vpop.f32.mrb[8].mxu1 }
 0xef7   :  { %v849_v57 = vrot.slane %v842_v56, 4  ;;  %v2404_v58 = vpop.f32.mrb[9].mxu1 }
 0xef8   :  { %v845_v59 = vpop.f32.mrb[10].mxu1 }
 0xef9   :  { %850 = vrot.lane.b32.xlu0 %v849_v57, %s2661_s1  ;;  %v2405_v60 = vpop.f32.mrb[11].mxu1 }
 0xf6b   :  { %v851_v61 = vpop.permute.xlu0 %850 }
 0xf6c   :  { %v853_v62 = vadd.f32 %v851_v61, %v2781_v37 }
 0xf6e   :  { %2574 = vtanh.f32 %v853_v62 }
 0xf78   :  { %v2575_v63 = vpop.eup %2574 }
 0xf79   :  { %861 = vrot.lane.b32.xlu0 %v2575_v63, %s2658_s18 }
 0xfeb   :  { %v862_v6 = vpop.permute.xlu0 %861 }
 0xfec   :  { %v864_v9 = vmul.f32 %v2573_v34, %v862_v6 }
 0xfee   :  { %v865_v10 = vadd.f32 %v864_v9, %v859_v8 }
 0xff0   :  { %v946_v11 = vrot.slane %v865_v10, 6 }
 0xff2   :  { %947 = vrot.lane.b32.xlu1 %v946_v11, %s2662_s29 }
 0xff6   :  { %703 = vrot.lane.b32.xlu1 %v697_v12, %s2659_s19 }
0x1064   :  { %v948_v14 = vpop.permute.xlu1 %947 }
0x1065   :  { %v950_v15 = vmul.f32 %v2786_v45, %v948_v14 }
0x1067   :  { %v951_v16 = vpack.c.bf16 %v950_v15, %v950_v15 }
0x1068   :  { %v704_v18 = vpop.permute.xlu1 %703 }
0x1069   :  { %v953_v17 = vrot.slane %v951_v16, 3  ;;  %v706_v19 = vadd.f32 %v704_v18, %v697_v12  ;;  %v306_v18 = vmax.f32 %v2784_v41, 0.0 }
0x106b   :  { %954 = vrot.lane.b32.xlu0 %v953_v17, %s2659_s19  ;;  %v2242_v20 = vmul.f32 -1.442695, %v706_v19 }
0x106d   :  { %2576 = vpow2.f32 %v2242_v20 }
0x106f   :  { %713 = vrot.lane.b32.xlu0 %v697_v12, %s2662_s29 }
0x1073   :  { %1010 = vrot.lane.b32.xlu0 %v950_v15, %s2658_s18 }
0x1077   :  { %v2577_v21 = vpop.eup %2576 }
0x1078   :  { %v710_v22 = vadd.f32 1.0, %v2577_v21 }
0x107a   :  { %2578 = vrcp.f32 %v710_v22 }
0x1084   :  { %v2579_v45 = vpop.eup %2578 }
0x1085   :  { %v723_v46 = vsub.f32 1.0, %v2579_v45  ;;  %v729_v48 = vmul.f32 %v2579_v45, %v2880_v44 }
0x10dd   :  { %v955_v23 = vpop.permute.xlu0 %954 }
0x10de   :  { %2417 = vmatmul.mubr.msk.bf16.vlgmr.msra.gmra.mrb[12].mxu1 %vm318_vm9, %v955_v23 }
0x10df   :  { %2427 = vmatpush3.bf16.msra.mxu1 %v2813_v7  ;;  %2430 = vmatprep.mubr.msk.bf16.mxu1 %vm2653_vm1, %v2652_v0 }
0x10e0   :  { %2428 = vmatprep.subr.bf16.mxu1 %v2652_v0 }
0x10e1   :  { %v714_v24 = vpop.permute.xlu0 %713 }
0x10e2   :  { %v716_v25 = vmul.f32 %v2579_v45, %v714_v24 }
0x10e3   :  { %2429 = vmatpush3.bf16.msra.mxu1 %v2824_v13 }
0x10e4   :  { %718 = vrot.lane.b32.xlu1 %v716_v25, %s2661_s1  ;;  %2440 = vmatprep.subr.bf16.mxu1 %v2652_v0 }
0x10e5   :  { %v1011_v39 = vpop.permute.xlu0 %1010 }
0x1156   :  { %v719_v26 = vpop.permute.xlu1 %718 }
0x1157   :  { %v721_v27 = vadd.f32 %v719_v26, %v697_v12 }
0x1159   :  { %2580 = vtanh.f32 %v721_v27 }
0x1163   :  { %v2581_v28 = vpop.eup %2580 }
0x1164   :  { %725 = vrot.lane.b32.xlu1 %v2581_v28, %s2660_s20 }
0x11b1   :  { %v993_v29 = vpop.f32.mrb[12].mxu1 }
0x11b2   :  { %v1000_v30 = vrot.slane %v993_v29, 2  ;;  %v2418_v31 = vpop.f32.mrb[13].mxu1 }
0x11b3   :  { %v996_v32 = vpop.f32.mrb[14].mxu1 }
0x11b4   :  { %v1002_v33 = vadd.f32 %v1000_v30, %v2781_v37  ;;  %v2419_v34 = vpop.f32.mrb[15].mxu1 }
0x11b6   :  { %v2249_v35 = vmul.f32 -1.442695, %v1002_v33 }
0x11b8   :  { %2582 = vpow2.f32 %v2249_v35 }
0x11c2   :  { %v2583_v2 = vpop.eup %2582 }
0x11c3   :  { %v1006_v3 = vadd.f32 1.0, %v2583_v2 }
0x11c5   :  { %2584 = vrcp.f32 %v1006_v3 }
0x11cf   :  { %v2585_v38 = vpop.eup %2584 }
0x11d0   :  { %v1013_v40 = vmul.f32 %v2585_v38, %v1011_v39 }
0x11d2   :  { %v1014_v42 = vpack.c.bf16 %v1013_v40, %v1013_v40 }
0x11d4   :  { %v1016_v43 = vrot.slane %v1014_v42, 3 }
0x11d6   :  { %1017 = vrot.lane.b32.xlu0 %v1016_v43, %s2660_s20  ;;  %v726_v47 = vpop.permute.xlu1 %725 }
0x11d7   :  { %v728_v50 = vmul.f32 %v726_v47, %v723_v46 }
0x11d9   :  { %v2917_v51 = vadd.f32 %v729_v48, %v728_v50 }
0x11da   :  { %1070 = vrot.lane.b32.xlu0 %v950_v15, %s2659_s19 }
0x11db   :  { %v867_v52 = vrot.slane %v2917_v51, 4 }
0x11dd   :  { %v869_v53 = vsel %vm318_vm9, %v865_v10, %v867_v52  ;;  %v1069_v10 = vsub.f32 1.0, %v2585_v38 }
0x11de   :  { %v870_v54 = vpack.c.bf16 %v869_v53, %v869_v53 }
0x11e0   :  { %v872_v55 = vrot.slane %v870_v54, 2 }
0x11e2   :  { %2411 = vmatmul.mubr.msk.bf16.vlgmr.msra.gmra.mrb[28].mxu0 %vm444_vm10, %v872_v55 }
0x11e3   :  { %2421 = vmatpush3.bf16.msra.mxu0 %v2796_v49  ;;  %2422 = vmatprep.mubr.msk.bf16.mxu0 %vm2653_vm1, %v2652_v0 }
0x11e4   :  { %2434 = vmatprep.subr.bf16.mxu0 %v2652_v0 }
0x1248   :  { %v1018_v44 = vpop.permute.xlu0 %1017 }
0x1249   :  { %2423 = vmatmul.mubr.msk.bf16.vlgmr.msra.gmra.mrb[32].mxu0 %vm318_vm9, %v1018_v44 }
0x124a   :  { %2435 = vmatpush3.bf16.msra.mxu0 %v2772_v36  ;;  %2436 = vmatprep.mubr.msk.bf16.mxu0 %vm2653_vm1, %v2652_v0 }
0x124b   :  { %2446 = vmatprep.subr.bf16.mxu0 %v2652_v0 }
0x124c   :  { %v1071_v9 = vpop.permute.xlu0 %1070 }
0x124d   :  { %v1073_v12 = vmul.f32 %v1071_v9, %v1069_v10 }
0x12b5   :  { %v910_v56 = vpop.f32.mrb[28].mxu0 }
0x12b6   :  { %v2412_v57 = vpop.f32.mrb[29].mxu0  ;;  %v911_v17 = vadd.f32 %v910_v56, %v2860_v5 }
0x12b7   :  { %v913_v58 = vpop.f32.mrb[30].mxu0 }
0x12b8   :  { %v2413_v59 = vpop.f32.mrb[31].mxu0 }
0x131c   :  { %v1056_v60 = vpop.f32.mrb[32].mxu0 }
0x131d   :  { %v1063_v61 = vrot.slane %v1056_v60, 2  ;;  %v2424_v62 = vpop.f32.mrb[33].mxu0 }
0x131e   :  { %v1059_v63 = vpop.f32.mrb[34].mxu0 }
0x131f   :  { %1064 = vrot.lane.b32.xlu1 %v1063_v61, %s2661_s1  ;;  %v2425_v1 = vpop.f32.mrb[35].mxu0 }
0x1391   :  { %v1065_v4 = vpop.permute.xlu1 %1064 }
0x1392   :  { %v1067_v6 = vadd.f32 %v1065_v4, %v2781_v37  ;;  %v308_v37 = vsub.f32 0.0, %v306_v18 }
0x1394   :  { %2586 = vtanh.f32 %v1067_v6  ;;  %v311_v19 = vmul.f32 1.442695, %v308_v37 }
0x1396   :  { %2588 = vpow2.f32 %v311_v19 }
0x139e   :  { %v2587_v8 = vpop.eup %2586 }
0x139f   :  { %1075 = vrot.lane.b32.xlu1 %v2587_v8, %s2658_s18 }
0x13a0   :  { %v2939_v20 = vpop.eup %2588 }
0x1411   :  { %v1076_v11 = vpop.permute.xlu1 %1075 }
0x1412   :  { %v1078_v14 = vmul.f32 %v2585_v38, %v1076_v11 }
0x1414   :  { %v1079_v15 = vadd.f32 %v1078_v14, %v1073_v12 }
0x1416   :  { %v1160_v16 = vrot.slane %v1079_v15, 6 }
0x1418   :  { %1161 = vrot.lane.b32.xlu0 %v1160_v16, %s2662_s29 }
0x141c   :  { %917 = vrot.lane.b32.xlu0 %v911_v17, %s2659_s19 }
0x148a   :  { %v1162_v21 = vpop.permute.xlu0 %1161 }
0x148b   :  { %v1164_v22 = vmul.f32 %v2939_v20, %v1162_v21 }
0x148d   :  { %v1165_v23 = vpack.c.bf16 %v1164_v22, %v1164_v22 }
0x148e   :  { %v918_v45 = vpop.permute.xlu0 %917 }
0x148f   :  { %1167 = vrot.lane.b32.xlu1 %v1165_v23, %s2659_s19  ;;  %v920_v24 = vadd.f32 %v918_v45, %v911_v17 }
0x1491   :  { %v2247_v25 = vmul.f32 -1.442695, %v920_v24 }
0x1493   :  { %927 = vrot.lane.b32.xlu1 %v911_v17, %s2662_s29  ;;  %2590 = vpow2.f32 %v2247_v25 }
0x1497   :  { %1220 = vrot.lane.b32.xlu1 %v1164_v22, %s2658_s18 }
0x149d   :  { %v2591_v26 = vpop.eup %2590 }
0x149e   :  { %v924_v27 = vadd.f32 1.0, %v2591_v26 }
0x14a0   :  { %2592 = vrcp.f32 %v924_v27 }
0x14aa   :  { %v2593_v29 = vpop.eup %2592 }
0x14ab   :  { %v937_v52 = vsub.f32 1.0, %v2593_v29  ;;  %v943_v54 = vmul.f32 %v2593_v29, %v2917_v51 }
0x1501   :  { %v1168_v28 = vpop.permute.xlu1 %1167 }
0x1502   :  { %2437 = vmatmul.mubr.msk.bf16.vlgmr.msra.gmra.mrb[36].mxu0 %vm318_vm9, %v1168_v28 }
0x1503   :  { %2447 = vmatpush3.bf16.msra.mxu0 %v2813_v7  ;;  %2450 = vmatprep.mubr.msk.bf16.mxu0 %vm2653_vm1, %v2652_v0 }
0x1504   :  { %2448 = vmatprep.subr.bf16.mxu0 %v2652_v0 }
0x1505   :  { %v928_v30 = vpop.permute.xlu1 %927 }
0x1506   :  { %v930_v31 = vmul.f32 %v2593_v29, %v928_v30 }
0x1507   :  { %2449 = vmatpush3.bf16.msra.mxu0 %v2824_v13 }
0x1508   :  { %932 = vrot.lane.b32.xlu0 %v930_v31, %s2661_s1  ;;  %2460 = vmatprep.subr.bf16.mxu0 %v2652_v0 }
0x1509   :  { %v1221_v47 = vpop.permute.xlu1 %1220 }
0x157a   :  { %v933_v32 = vpop.permute.xlu0 %932 }
0x157b   :  { %v935_v33 = vadd.f32 %v933_v32, %v911_v17 }
0x157d   :  { %2594 = vtanh.f32 %v935_v33 }
0x1587   :  { %v2595_v34 = vpop.eup %2594 }
0x1588   :  { %939 = vrot.lane.b32.xlu0 %v2595_v34, %s2660_s20 }
0x15d5   :  { %v1206_v35 = vpop.f32.mrb[36].mxu0 }
0x15d6   :  { %v1212_v2 = vadd.f32 %v1206_v35, %v2784_v41  ;;  %v2438_v3 = vpop.f32.mrb[37].mxu0 }
0x15d7   :  { %v1209_v38 = vpop.f32.mrb[38].mxu0 }
0x15d8   :  { %v2254_v39 = vmul.f32 -1.442695, %v1212_v2  ;;  %v2439_v40 = vpop.f32.mrb[39].mxu0 }
0x15da   :  { %2596 = vpow2.f32 %v2254_v39 }
0x15e4   :  { %v2597_v42 = vpop.eup %2596 }
0x15e5   :  { %v1216_v43 = vadd.f32 1.0, %v2597_v42 }
0x15e7   :  { %2598 = vrcp.f32 %v1216_v43 }
0x15f1   :  { %v2599_v46 = vpop.eup %2598 }
0x15f2   :  { %v1223_v48 = vmul.f32 %v2599_v46, %v1221_v47  ;;  %v1277_v14 = vsub.f32 1.0, %v2599_v46 }
0x15f4   :  { %v1224_v50 = vpack.c.bf16 %v1223_v48, %v1223_v48 }
0x15f6   :  { %1226 = vrot.lane.b32.xlu1 %v1224_v50, %s2660_s20 }
0x15fa   :  { %v940_v53 = vpop.permute.xlu0 %939  ;;  %1278 = vrot.lane.b32.xlu1 %v1164_v22, %s2659_s19 }
0x15fb   :  { %v942_v55 = vmul.f32 %v940_v53, %v937_v52 }
0x15fd   :  { %v2958_v44 = vadd.f32 %v943_v54, %v942_v55 }
0x15ff   :  { %v1081_v56 = vrot.slane %v2958_v44, 2 }
0x1601   :  { %v1083_v57 = vsel %vm318_vm9, %v1079_v15, %v1081_v56 }
0x1602   :  { %v1084_v58 = vpack.c.bf16 %v1083_v57, %v1083_v57 }
0x1604   :  { %v1086_v59 = vrot.slane %v1084_v58, 3 }
0x1606   :  { %2431 = vmatmul.mubr.msk.bf16.vlgmr.msra.gmra.mrb[16].mxu1 %vm444_vm10, %v1086_v59 }
0x1607   :  { %2441 = vmatpush3.bf16.msra.mxu1 %v2796_v49  ;;  %2442 = vmatprep.mubr.msk.bf16.mxu1 %vm2653_vm1, %v2652_v0 }
0x1608   :  { %2454 = vmatprep.subr.bf16.mxu1 %v2652_v0 }
0x1668   :  { %v1227_v60 = vpop.permute.xlu1 %1226 }
0x1669   :  { %2443 = vmatmul.mubr.msk.bf16.vlgmr.msra.gmra.mrb[20].mxu1 %vm318_vm9, %v1227_v60 }
0x166a   :  { %2455 = vmatpush3.bf16.msra.mxu1 %v2772_v36  ;;  %2456 = vmatprep.mubr.msk.bf16.mxu1 %vm2653_vm1, %v2652_v0 }
0x166b   :  { %2466 = vmatprep.subr.bf16.mxu1 %v2652_v0 }
0x166c   :  { %v1279_v12 = vpop.permute.xlu1 %1278 }
0x166d   :  { %v1281_v16 = vmul.f32 %v1279_v12, %v1277_v14 }
0x16d9   :  { %v1124_v51 = vpop.f32.mrb[16].mxu1 }
0x16da   :  { %v2432_v61 = vpop.f32.mrb[17].mxu1  ;;  %v1125_v19 = vadd.f32 %v1124_v51, %v2860_v5 }
0x16db   :  { %v1127_v62 = vpop.f32.mrb[18].mxu1 }
0x16dc   :  { %v2433_v63 = vpop.f32.mrb[19].mxu1 }
0x173c   :  { %v1265_v1 = vpop.f32.mrb[20].mxu1 }
0x173d   :  { %1272 = vrot.lane.b32.xlu0 %v1265_v1, %s2661_s1  ;;  %v2444_v4 = vpop.f32.mrb[21].mxu1 }
0x173e   :  { %v1268_v6 = vpop.f32.mrb[22].mxu1 }
0x173f   :  { %v2445_v8 = vpop.f32.mrb[23].mxu1 }
0x17af   :  { %v1273_v9 = vpop.permute.xlu0 %1272 }
0x17b0   :  { %v1275_v10 = vadd.f32 %v1273_v9, %v2784_v41 }
0x17b2   :  { %2600 = vtanh.f32 %v1275_v10 }
0x17bc   :  { %v2601_v11 = vpop.eup %2600 }
0x17bd   :  { %1283 = vrot.lane.b32.xlu0 %v2601_v11, %s2658_s18 }
0x182f   :  { %v1284_v15 = vpop.permute.xlu0 %1283 }
0x1830   :  { %v1286_v17 = vmul.f32 %v2599_v46, %v1284_v15 }
0x1832   :  { %v1287_v18 = vadd.f32 %v1286_v17, %v1281_v16 }
0x1834   :  { %v1363_v37 = vrot.slane %v1287_v18, 6 }
0x1836   :  { %1364 = vrot.lane.b32.xlu1 %v1363_v37, %s2662_s29 }
0x183a   :  { %1131 = vrot.lane.b32.xlu1 %v1125_v19, %s2659_s19 }
0x18a8   :  { %v1365_v21 = vpop.permute.xlu1 %1364 }
0x18a9   :  { %v1367_v22 = vmul.f32 %v2939_v20, %v1365_v21 }
0x18ab   :  { %v1368_v23 = vpack.c.bf16 %v1367_v22, %v1367_v22 }
0x18ac   :  { %v1132_v24 = vpop.permute.xlu1 %1131 }
0x18ad   :  { %v1370_v45 = vrot.slane %v1368_v23, 1  ;;  %v1134_v25 = vadd.f32 %v1132_v24, %v1125_v19 }
0x18af   :  { %1371 = vrot.lane.b32.xlu0 %v1370_v45, %s2659_s19  ;;  %v2252_v26 = vmul.f32 -1.442695, %v1134_v25 }
0x18b1   :  { %2602 = vpow2.f32 %v2252_v26 }
0x18b3   :  { %1141 = vrot.lane.b32.xlu0 %v1125_v19, %s2662_s29 }
0x18b7   :  { %1427 = vrot.lane.b32.xlu0 %v1367_v22, %s2658_s18 }
0x18bb   :  { %v2603_v27 = vpop.eup %2602 }
0x18bc   :  { %v1138_v28 = vadd.f32 1.0, %v2603_v27 }
0x18be   :  { %2604 = vrcp.f32 %v1138_v28 }
0x18c8   :  { %v2605_v30 = vpop.eup %2604 }
0x18c9   :  { %v1151_v55 = vsub.f32 1.0, %v2605_v30  ;;  %v1157_v57 = vmul.f32 %v2605_v30, %v2958_v44 }
0x1921   :  { %v1372_v29 = vpop.permute.xlu0 %1371 }
0x1922   :  { %2457 = vmatmul.mubr.msk.bf16.vlgmr.msra.gmra.mrb[24].mxu1 %vm318_vm9, %v1372_v29 }
0x1923   :  { %2467 = vmatpush3.bf16.msra.mxu1 %v2813_v7  ;;  %2470 = vmatprep.mubr.msk.bf16.mxu1 %vm2653_vm1, %v2652_v0 }
0x1924   :  { %2468 = vmatprep.subr.bf16.mxu1 %v2652_v0 }
0x1925   :  { %v1142_v31 = vpop.permute.xlu0 %1141 }
0x1926   :  { %v1144_v32 = vmul.f32 %v2605_v30, %v1142_v31 }
0x1927   :  { %2469 = vmatpush3.bf16.msra.mxu1 %v2824_v13 }
0x1928   :  { %1146 = vrot.lane.b32.xlu1 %v1144_v32, %s2661_s1  ;;  %2480 = vmatprep.subr.bf16.mxu1 %v2652_v0 }
0x1929   :  { %v1428_v50 = vpop.permute.xlu0 %1427 }
0x199a   :  { %v1147_v33 = vpop.permute.xlu1 %1146 }
0x199b   :  { %v1149_v34 = vadd.f32 %v1147_v33, %v1125_v19 }
0x199d   :  { %2606 = vtanh.f32 %v1149_v34 }
0x19a7   :  { %v2607_v35 = vpop.eup %2606 }
0x19a8   :  { %1153 = vrot.lane.b32.xlu1 %v2607_v35, %s2660_s20 }
0x19f5   :  { %v1410_v2 = vpop.f32.mrb[24].mxu1 }
0x19f6   :  { %v1417_v3 = vrot.slane %v1410_v2, 6  ;;  %v2458_v38 = vpop.f32.mrb[25].mxu1 }
0x19f7   :  { %v1413_v39 = vpop.f32.mrb[26].mxu1 }
0x19f8   :  { %v1419_v40 = vadd.f32 %v1417_v3, %v2784_v41  ;;  %v2459_v42 = vpop.f32.mrb[27].mxu1 }
0x19fa   :  { %v2259_v43 = vmul.f32 -1.442695, %v1419_v40 }
0x19fc   :  { %2608 = vpow2.f32 %v2259_v43 }
0x1a06   :  { %v2609_v46 = vpop.eup %2608 }
0x1a07   :  { %v1423_v47 = vadd.f32 1.0, %v2609_v46 }
0x1a09   :  { %2610 = vrcp.f32 %v1423_v47 }
0x1a13   :  { %v2611_v48 = vpop.eup %2610 }
0x1a14   :  { %v1430_v52 = vmul.f32 %v2611_v48, %v1428_v50  ;;  %v1486_v16 = vsub.f32 1.0, %v2611_v48 }
0x1a16   :  { %v1431_v53 = vpack.c.bf16 %v1430_v52, %v1430_v52 }
0x1a18   :  { %v1433_v54 = vrot.slane %v1431_v53, 1 }
0x1a1a   :  { %1434 = vrot.lane.b32.xlu0 %v1433_v54, %s2660_s20  ;;  %v1154_v56 = vpop.permute.xlu1 %1153 }
0x1a1b   :  { %v1156_v58 = vmul.f32 %v1154_v56, %v1151_v55 }
0x1a1d   :  { %v2994_v59 = vadd.f32 %v1157_v57, %v1156_v58 }
0x1a1e   :  { %1487 = vrot.lane.b32.xlu0 %v1367_v22, %s2659_s19 }
0x1a1f   :  { %v1288_v60 = vsel %vm318_vm9, %v1287_v18, %v2994_v59 }
0x1a20   :  { %v1289_v51 = vpack.c.bf16 %v1288_v60, %v1288_v60 }
0x1a22   :  { %2451 = vmatmul.mubr.msk.bf16.vlgmr.msra.gmra.mrb[40].mxu0 %vm444_vm10, %v1289_v51 }
0x1a23   :  { %2461 = vmatpush3.bf16.msra.mxu0 %v2796_v49  ;;  %2462 = vmatprep.mubr.msk.bf16.mxu0 %vm2653_vm1, %v2652_v0 }
0x1a24   :  { %2474 = vmatprep.subr.bf16.mxu0 %v2652_v0 }
0x1a8c   :  { %v1435_v61 = vpop.permute.xlu0 %1434 }
0x1a8d   :  { %2463 = vmatmul.mubr.msk.bf16.vlgmr.msra.gmra.mrb[44].mxu0 %vm318_vm9, %v1435_v61 }
0x1a8e   :  { %2475 = vmatpush3.bf16.msra.mxu0 %v2772_v36  ;;  %2476 = vmatprep.mubr.msk.bf16.mxu0 %vm2653_vm1, %v2652_v0 }
0x1a8f   :  { %2486 = vmatprep.subr.bf16.mxu0 %v2652_v0 }
0x1a90   :  { %v1488_v15 = vpop.permute.xlu0 %1487 }
0x1a91   :  { %v1490_v18 = vmul.f32 %v1488_v15, %v1486_v16 }
0x1af5   :  { %v1327_v44 = vpop.f32.mrb[40].mxu0 }
0x1af6   :  { %v2452_v62 = vpop.f32.mrb[41].mxu0  ;;  %v1328_v22 = vadd.f32 %v1327_v44, %v2860_v5 }
0x1af7   :  { %v1330_v63 = vpop.f32.mrb[42].mxu0 }
0x1af8   :  { %v2453_v1 = vpop.f32.mrb[43].mxu0 }
0x1b60   :  { %v1473_v4 = vpop.f32.mrb[44].mxu0 }
0x1b61   :  { %v1480_v6 = vrot.slane %v1473_v4, 6  ;;  %v2464_v8 = vpop.f32.mrb[45].mxu0 }
0x1b62   :  { %v1476_v9 = vpop.f32.mrb[46].mxu0 }
0x1b63   :  { %1481 = vrot.lane.b32.xlu1 %v1480_v6, %s2661_s1  ;;  %v2465_v10 = vpop.f32.mrb[47].mxu0 }
0x1bd5   :  { %v1482_v11 = vpop.permute.xlu1 %1481 }
0x1bd6   :  { %v1484_v12 = vadd.f32 %v1482_v11, %v2784_v41 }
0x1bd8   :  { %2612 = vtanh.f32 %v1484_v12 }
0x1be2   :  { %v2613_v14 = vpop.eup %2612 }
0x1be3   :  { %1492 = vrot.lane.b32.xlu1 %v2613_v14, %s2658_s18 }
0x1c55   :  { %v1493_v17 = vpop.permute.xlu1 %1492 }
0x1c56   :  { %v1495_v37 = vmul.f32 %v2611_v48, %v1493_v17 }
0x1c58   :  { %v1496_v19 = vadd.f32 %v1495_v37, %v1490_v18 }
0x1c5a   :  { %v1577_v21 = vrot.slane %v1496_v19, 6 }
0x1c5c   :  { %1578 = vrot.lane.b32.xlu0 %v1577_v21, %s2662_s29 }
0x1c60   :  { %1334 = vrot.lane.b32.xlu0 %v1328_v22, %s2659_s19 }
0x1cce   :  { %v1579_v23 = vpop.permute.xlu0 %1578 }
0x1ccf   :  { %v1581_v45 = vmul.f32 %v2939_v20, %v1579_v23 }
0x1cd1   :  { %v1582_v24 = vpack.c.bf16 %v1581_v45, %v1581_v45 }
0x1cd2   :  { %v1335_v26 = vpop.permute.xlu0 %1334 }
0x1cd3   :  { %v1584_v25 = vrot.slane %v1582_v24, 2  ;;  %v1337_v27 = vadd.f32 %v1335_v26, %v1328_v22 }
0x1cd5   :  { %1585 = vrot.lane.b32.xlu1 %v1584_v25, %s2659_s19  ;;  %v2257_v28 = vmul.f32 -1.442695, %v1337_v27 }
0x1cd7   :  { %2614 = vpow2.f32 %v2257_v28 }
0x1cd9   :  { %1344 = vrot.lane.b32.xlu1 %v1328_v22, %s2662_s29 }
0x1cdd   :  { %1641 = vrot.lane.b32.xlu1 %v1581_v45, %s2658_s18 }
0x1ce1   :  { %v2615_v29 = vpop.eup %2614 }
0x1ce2   :  { %v1341_v30 = vadd.f32 1.0, %v2615_v29 }
0x1ce4   :  { %2616 = vrcp.f32 %v1341_v30 }
0x1cee   :  { %v2617_v32 = vpop.eup %2616 }
0x1cef   :  { %v1354_v57 = vsub.f32 1.0, %v2617_v32  ;;  %v1360_v60 = vmul.f32 %v2617_v32, %v2994_v59 }
0x1d47   :  { %v1586_v31 = vpop.permute.xlu1 %1585 }
0x1d48   :  { %2477 = vmatmul.mubr.msk.bf16.vlgmr.msra.gmra.mrb[48].mxu0 %vm318_vm9, %v1586_v31 }
0x1d49   :  { %2487 = vmatpush3.bf16.msra.mxu0 %v2813_v7  ;;  %2490 = vmatprep.mubr.msk.bf16.mxu0 %vm2653_vm1, %v2652_v0 }
0x1d4a   :  { %2488 = vmatprep.subr.bf16.mxu0 %v2652_v0 }
0x1d4b   :  { %v1345_v33 = vpop.permute.xlu1 %1344 }
0x1d4c   :  { %v1347_v34 = vmul.f32 %v2617_v32, %v1345_v33 }
0x1d4d   :  { %2489 = vmatpush3.bf16.msra.mxu0 %v2824_v13 }
0x1d4e   :  { %1349 = vrot.lane.b32.xlu0 %v1347_v34, %s2661_s1  ;;  %2500 = vmatprep.subr.bf16.mxu0 %v2652_v0 }
0x1d4f   :  { %v1642_v53 = vpop.permute.xlu1 %1641 }
0x1dc0   :  { %v1350_v35 = vpop.permute.xlu0 %1349 }
0x1dc1   :  { %v1352_v2 = vadd.f32 %v1350_v35, %v1328_v22 }
0x1dc3   :  { %2618 = vtanh.f32 %v1352_v2 }
0x1dcd   :  { %v2619_v3 = vpop.eup %2618 }
0x1dce   :  { %1356 = vrot.lane.b32.xlu0 %v2619_v3, %s2660_s20 }
0x1e1b   :  { %v1624_v38 = vpop.f32.mrb[48].mxu0 }
0x1e1c   :  { %v1631_v39 = vrot.slane %v1624_v38, 4  ;;  %v2478_v40 = vpop.f32.mrb[49].mxu0 }
0x1e1d   :  { %v1627_v42 = vpop.f32.mrb[50].mxu0 }
0x1e1e   :  { %v1633_v43 = vadd.f32 %v1631_v39, %v2784_v41  ;;  %v2479_v46 = vpop.f32.mrb[51].mxu0 }
0x1e20   :  { %v2264_v47 = vmul.f32 -1.442695, %v1633_v43 }
0x1e22   :  { %2620 = vpow2.f32 %v2264_v47 }
0x1e2c   :  { %v2621_v48 = vpop.eup %2620 }
0x1e2d   :  { %v1637_v50 = vadd.f32 1.0, %v2621_v48 }
0x1e2f   :  { %2622 = vrcp.f32 %v1637_v50 }
0x1e39   :  { %v2623_v52 = vpop.eup %2622 }
0x1e3a   :  { %v1644_v54 = vmul.f32 %v2623_v52, %v1642_v53  ;;  %v1700_v37 = vsub.f32 1.0, %v2623_v52 }
0x1e3c   :  { %v1645_v55 = vpack.c.bf16 %v1644_v54, %v1644_v54 }
0x1e3e   :  { %v1647_v56 = vrot.slane %v1645_v55, 2 }
0x1e40   :  { %v1357_v58 = vpop.permute.xlu0 %1356  ;;  %1648 = vrot.lane.b32.xlu1 %v1647_v56, %s2660_s20 }
0x1e41   :  { %v1359_v51 = vmul.f32 %v1357_v58, %v1354_v57 }
0x1e43   :  { %v3031_v61 = vadd.f32 %v1360_v60, %v1359_v51 }
0x1e44   :  { %1701 = vrot.lane.b32.xlu1 %v1581_v45, %s2659_s19 }
0x1e45   :  { %v1498_v44 = vrot.slane %v3031_v61, 6 }
0x1e47   :  { %v1500_v62 = vsel %vm318_vm9, %v1496_v19, %v1498_v44 }
0x1e48   :  { %v1501_v63 = vpack.c.bf16 %v1500_v62, %v1500_v62 }
0x1e4a   :  { %v1503_v1 = vrot.slane %v1501_v63, 1 }
0x1e4c   :  { %2471 = vmatmul.mubr.msk.bf16.vlgmr.msra.gmra.mrb[28].mxu1 %vm444_vm10, %v1503_v1 }
0x1e4d   :  { %2481 = vmatpush3.bf16.msra.mxu1 %v2796_v49  ;;  %2482 = vmatprep.mubr.msk.bf16.mxu1 %vm2653_vm1, %v2652_v0 }
0x1e4e   :  { %2494 = vmatprep.subr.bf16.mxu1 %v2652_v0 }
0x1eb2   :  { %v1649_v59 = vpop.permute.xlu1 %1648 }
0x1eb3   :  { %2483 = vmatmul.mubr.msk.bf16.vlgmr.msra.gmra.mrb[32].mxu1 %vm318_vm9, %v1649_v59 }
0x1eb4   :  { %2495 = vmatpush3.bf16.msra.mxu1 %v2772_v36  ;;  %2496 = vmatprep.mubr.msk.bf16.mxu1 %vm2653_vm1, %v2652_v0 }
0x1eb5   :  { %2506 = vmatprep.subr.bf16.mxu1 %v2652_v0 }
0x1eb6   :  { %v1702_v18 = vpop.permute.xlu1 %1701 }
0x1eb7   :  { %v1704_v21 = vmul.f32 %v1702_v18, %v1700_v37 }
0x1f1f   :  { %v1541_v4 = vpop.f32.mrb[28].mxu1 }
0x1f20   :  { %v2472_v6 = vpop.f32.mrb[29].mxu1  ;;  %v1542_v24 = vadd.f32 %v1541_v4, %v2860_v5  ;;  %v2650_v4 = vld [vmem:[%s3234_s3 + $0x5] ss:$0 sm:$0xff] }
0x1f21   :  { %v1544_v8 = vpop.f32.mrb[30].mxu1 }
0x1f22   :  { %v2473_v9 = vpop.f32.mrb[31].mxu1 }
0x1f86   :  { %v1687_v10 = vpop.f32.mrb[32].mxu1 }
0x1f87   :  { %v1694_v11 = vrot.slane %v1687_v10, 4  ;;  %v2484_v12 = vpop.f32.mrb[33].mxu1 }
0x1f88   :  { %v1690_v14 = vpop.f32.mrb[34].mxu1 }
0x1f89   :  { %1695 = vrot.lane.b32.xlu0 %v1694_v11, %s2661_s1  ;;  %v2485_v15 = vpop.f32.mrb[35].mxu1 }
0x1ffb   :  { %v1696_v16 = vpop.permute.xlu0 %1695 }
0x1ffc   :  { %v1698_v17 = vadd.f32 %v1696_v16, %v2784_v41 }
0x1ffe   :  { %2624 = vtanh.f32 %v1698_v17 }
0x2008   :  { %v2625_v36 = vpop.eup %2624 }
0x2009   :  { %1706 = vrot.lane.b32.xlu0 %v2625_v36, %s2658_s18 }
0x207b   :  { %v1707_v19 = vpop.permute.xlu0 %1706 }
0x207c   :  { %v1709_v22 = vmul.f32 %v2623_v52, %v1707_v19 }
0x207e   :  { %v1710_v23 = vadd.f32 %v1709_v22, %v1704_v21 }
0x2080   :  { %v1791_v45 = vrot.slane %v1710_v23, 6 }
0x2082   :  { %1792 = vrot.lane.b32.xlu1 %v1791_v45, %s2662_s29 }
0x2086   :  { %1548 = vrot.lane.b32.xlu1 %v1542_v24, %s2659_s19 }
0x20f4   :  { %v1793_v25 = vpop.permute.xlu1 %1792 }
0x20f5   :  { %v3053_v26 = vmul.f32 %v2939_v20, %v1793_v25 }
0x20f7   :  { %v1796_v27 = vpack.c.bf16 %v3053_v26, %v3053_v26 }
0x20f8   :  { %v1549_v29 = vpop.permute.xlu1 %1548 }
0x20f9   :  { %v1798_v28 = vrot.slane %v1796_v27, 3  ;;  %v1551_v30 = vadd.f32 %v1549_v29, %v1542_v24 }
0x20fb   :  { %1799 = vrot.lane.b32.xlu0 %v1798_v28, %s2659_s19  ;;  %v2262_v31 = vmul.f32 -1.442695, %v1551_v30 }
0x20fd   :  { %2626 = vpow2.f32 %v2262_v31 }
0x20ff   :  { %1558 = vrot.lane.b32.xlu0 %v1542_v24, %s2662_s29 }
0x2107   :  { %v2627_v32 = vpop.eup %2626 }
0x2108   :  { %v1555_v5 = vadd.f32 1.0, %v2627_v32 }
0x210a   :  { %2628 = vrcp.f32 %v1555_v5 }
0x2114   :  { %v2629_v20 = vpop.eup %2628 }
0x2115   :  { %v1568_v56 = vsub.f32 1.0, %v2629_v20  ;;  %v1574_v58 = vmul.f32 %v2629_v20, %v3031_v61 }
0x216d   :  { %v1800_v33 = vpop.permute.xlu0 %1799 }
0x216e   :  { %2497 = vmatmul.mubr.msk.bf16.vlgmr.msra.gmra.mrb[36].mxu1 %vm318_vm9, %v1800_v33 }
0x216f   :  { %2507 = vmatpush3.bf16.msra.mxu1 %v2813_v7  ;;  %2510 = vmatprep.mubr.msk.bf16.mxu1 %vm2653_vm1, %v2652_v0 }
0x2170   :  { %2508 = vmatprep.subr.bf16.mxu1 %v2652_v0 }
0x2171   :  { %v1559_v34 = vpop.permute.xlu0 %1558 }
0x2172   :  { %v1561_v35 = vmul.f32 %v2629_v20, %v1559_v34 }
0x2173   :  { %2509 = vmatpush3.bf16.msra.mxu1 %v2824_v13 }
0x2174   :  { %1563 = vrot.lane.b32.xlu1 %v1561_v35, %s2661_s1 }
0x2178   :  { %1855 = vrot.lane.b32.xlu1 %v3053_v26, %s2658_s18 }
0x21e6   :  { %v1564_v2 = vpop.permute.xlu1 %1563 }
0x21e7   :  { %v1566_v3 = vadd.f32 %v1564_v2, %v1542_v24 }
0x21e9   :  { %2630 = vtanh.f32 %v1566_v3 }
0x21ea   :  { %v1856_v52 = vpop.permute.xlu1 %1855 }
0x21f3   :  { %v2631_v38 = vpop.eup %2630 }
0x21f4   :  { %1570 = vrot.lane.b32.xlu0 %v2631_v38, %s2660_s20 }
0x2241   :  { %v1838_v7 = vpop.f32.mrb[36].mxu1 }
0x2242   :  { %v1845_v39 = vrot.slane %v1838_v7, 2  ;;  %v2498_v40 = vpop.f32.mrb[37].mxu1 }
0x2243   :  { %v1841_v42 = vpop.f32.mrb[38].mxu1 }
0x2244   :  { %v1847_v43 = vadd.f32 %v1845_v39, %v2784_v41  ;;  %v2499_v46 = vpop.f32.mrb[39].mxu1 }
0x2246   :  { %v2269_v47 = vmul.f32 -1.442695, %v1847_v43 }
0x2248   :  { %2632 = vpow2.f32 %v2269_v47 }
0x2252   :  { %v2633_v13 = vpop.eup %2632 }
0x2253   :  { %v1851_v48 = vadd.f32 1.0, %v2633_v13 }
0x2255   :  { %2634 = vrcp.f32 %v1851_v48 }
0x225f   :  { %v3070_v50 = vpop.eup %2634 }
0x2260   :  { %v1858_v53 = vmul.f32 %v3070_v50, %v1856_v52  ;;  %v1914_v32 = vsub.f32 1.0, %v3070_v50 }
0x2262   :  { %v1859_v54 = vpack.c.bf16 %v1858_v53, %v1858_v53 }
0x2264   :  { %v1861_v55 = vrot.slane %v1859_v54, 3 }
0x2266   :  { %v1571_v57 = vpop.permute.xlu0 %1570  ;;  %1862 = vrot.lane.b32.xlu0 %v1861_v55, %s2660_s20  ;;  %v18_v55 = vld [vmem:[%s3232_s2] sm:$0xff] }
0x2267   :  { %v1573_v60 = vmul.f32 %v1571_v57, %v1568_v56  ;;  %v19_v56 = vld [vmem:[%s3232_s2 + $0x10] sm:$0x3] }
0x2268   :  { %v20_v57 = vpack.c.bf16 %v19_v56, %v18_v55  ;;  %v65_v56 = vld [vmem:[%s3232_s2 + $0x200] sm:$0xff] }
0x2269   :  { %v1575_v51 = vadd.f32 %v1574_v58, %v1573_v60  ;;  %v2651_v60 = vld [vmem:[%s3235_s0] sm:$0x3] }
0x226a   :  { %v2011_v58 = vsel %vm2009_vm11, %v20_v57, 0  ;;  %v66_v57 = vld [vmem:[%s3232_s2 + $0x210] sm:$0xff] }
0x226b   :  { %v1712_v44 = vrot.slane %v1575_v51, 4 }
0x226d   :  { %v1714_v62 = vsel %vm318_vm9, %v1710_v23, %v1712_v44 }
0x226e   :  { %v1715_v63 = vpack.c.bf16 %v1714_v62, %v1714_v62 }
0x2270   :  { %v1717_v1 = vrot.slane %v1715_v63, 2  ;;  %v42_v63 = vld [vmem:[%s3232_s2 + $0xe8] sm:$0xff] }
0x2272   :  { %2491 = vmatmul.mubr.msk.bf16.vlgmr.msra.gmra.mrb[52].mxu0 %vm444_vm10, %v1717_v1  ;;  %v44_v1 = vld [vmem:[%s3232_s2 + $0xf8] sm:$0xff] }
0x2273   :  { %2501 = vmatpush3.bf16.msra.mxu0 %v2796_v49  ;;  %2502 = vmatprep.mubr.msk.bf16.mxu0 %vm2653_vm1, %v2652_v0 }
0x2274   :  { %2514 = vmatprep.subr.bf16.mxu0 %v2652_v0 }
0x22d8   :  { %v1863_v59 = vpop.permute.xlu0 %1862 }
0x22d9   :  { %2503 = vmatmul.mubr.msk.bf16.vlgmr.msra.gmra.mrb[56].mxu0 %vm318_vm9, %v1863_v59  ;;  %v48_v59 = vpack.c.bf16 %v44_v1, %v42_v63 }
0x22da   :  { %2516 = vmatprep.mubr.msk.bf16.mxu0 %vm2653_vm1, %v2652_v0  ;;  %2515 = vmatpush3.bf16.msra.mxu0 %v2011_v58  ;;  %v77_v58 = vpack.c.bf16 %v66_v57, %v65_v56 }
0x22db   :  { %2062 = vmatprep.subr.bf16.mxu1 %v48_v59  ;;  %v2230_v59 = vld [vmem:[%s3234_s3 + $0x6] ss:$8 sm:$0x3] }
0x2345   :  { %v1755_v61 = vpop.f32.mrb[52].mxu0 }
0x2346   :  { %v1756_v6 = vadd.f32 %v2650_v4, %v1755_v61  ;;  %v2492_v8 = vpop.f32.mrb[53].mxu0  ;;  %v38_v61 = vld [vmem:[%s3232_s2 + $0xc8] sm:$0xff] }
0x2347   :  { %v1758_v9 = vpop.f32.mrb[54].mxu0  ;;  %v2663_v8 = vmov 0  }
0x2348   :  { %1772 = vrot.lane.b32.xlu0 %v1756_v6, %s2662_s29  ;;  %1762 = vrot.lane.b32.xlu1 %v1756_v6, %s2659_s19  ;;  %v2493_v49 = vpop.f32.mrb[55].mxu0 }
0x2349   :  { %v43_v49 = vld [vmem:[%s3232_s2 + $0xf0] sm:$0xff] }
0x23ac   :  { %v1901_v10 = vpop.f32.mrb[56].mxu0 }
0x23ad   :  { %v1908_v11 = vrot.slane %v1901_v10, 2  ;;  %v2504_v12 = vpop.f32.mrb[57].mxu0  ;;  %v37_v10 = vld [vmem:[%s3232_s2 + $0xc0] sm:$0xff] }
0x23ae   :  { %v1904_v14 = vpop.f32.mrb[58].mxu0 }
0x23af   :  { %1909 = vrot.lane.b32.xlu0 %v1908_v11, %s2661_s1  ;;  %v2505_v0 = vpop.f32.mrb[59].mxu0  ;;  %v39_v11 = vld [vmem:[%s3232_s2 + $0xd0] sm:$0xff] }
0x23b0   :  { %v45_v14 = vpack.c.bf16 %v39_v11, %v37_v10 }
0x23b3   :  { %1915 = vrot.lane.b32.xlu0 %v3053_v26, %s2659_s19 }
0x23ba   :  { %v1763_v15 = vpop.permute.xlu1 %1762  ;;  %v1773_v19 = vpop.permute.xlu0 %1772 }
0x23bb   :  { %v1765_v16 = vadd.f32 %v1763_v15, %v1756_v6  ;;  %v79_v15 = vld [vmem:[%s3234_s3] ss:$0 sm:$0xff] }
0x23bd   :  { %v2267_v17 = vmul.f32 -1.442695, %v1765_v16 }
0x23bf   :  { %2636 = vpow2.f32 %v2267_v17 }
0x23c9   :  { %v2637_v36 = vpop.eup %2636 }
0x23ca   :  { %v1769_v18 = vadd.f32 1.0, %v2637_v36 }
0x23cc   :  { %2638 = vrcp.f32 %v1769_v18 }
0x23d6   :  { %v2639_v37 = vpop.eup %2638 }
0x23d7   :  { %v1775_v21 = vmul.f32 %v2639_v37, %v1773_v19  ;;  %v1782_v27 = vsub.f32 1.0, %v2639_v37  ;;  %v1788_v29 = vmul.f32 %v2639_v37, %v1575_v51  ;;  %v2004_v51 = vpack.c.bf16 %v2651_v60, %v2651_v60  ;;  %v67_v60 = vld [vmem:[%s3232_s2 + $0x220] sm:$0xff] }
0x23d9   :  { %1777 = vrot.lane.b32.xlu1 %v1775_v21, %s2661_s1  ;;  %2517 = vmatmul.mubr.msk.bf16.vlgmr.msra.gmra.mrb[60].mxu0 %vm2005_vm12, %v2004_v51  ;;  %v68_v51 = vld [vmem:[%s3232_s2 + $0x230] sm:$0xff] }
0x23da   :  { %2138 = vmatprep.mubr.bf16.mxu0 %v2663_v8 }
0x2421   :  { %v1910_v22 = vpop.permute.xlu0 %1909 }
0x2422   :  { %v1912_v24 = vadd.f32 %v1910_v22, %v2784_v41 }
0x2425   :  { %v1916_v31 = vpop.permute.xlu0 %1915 }
0x2426   :  { %v1918_v20 = vmul.f32 %v1916_v31, %v1914_v32  ;;  %v52_v31 = vld [vmem:[%s3232_s2 + $0x130] sm:$0xff] }
0x244b   :  { %v1778_v23 = vpop.permute.xlu1 %1777 }
0x244c   :  { %v1780_v45 = vadd.f32 %v1778_v23, %v1756_v6  ;;  %v41_v6 = vld [vmem:[%s3232_s2 + $0xe0] sm:$0xff] }
0x244d   :  { %v47_v12 = vpack.c.bf16 %v43_v49, %v41_v6 }
0x244e   :  { %2640 = vtanh.f32 %v1780_v45 }
0x244f   :  { %2642 = vtanh.f32 %v1912_v24 }
0x2458   :  { %v2641_v25 = vpop.eup %2640 }
0x2459   :  { %1784 = vrot.lane.b32.xlu1 %v2641_v25, %s2660_s20  ;;  %v2643_v26 = vpop.eup %2642 }
0x245d   :  { %1920 = vrot.lane.b32.xlu1 %v2643_v26, %s2658_s18 }
0x24ac   :  { %v2047_v16 = vpop.f32.mrb[60].mxu0 }
0x24ad   :  { %v2048_v17 = vadd.f32 %v2047_v16, %v79_v15  ;;  %v2518_v36 = vpop.f32.mrb[61].mxu0 }
0x24ae   :  { %v2050_v18 = vpop.f32.mrb[62].mxu0 }
0x24af   :  { %v2053_v37 = vmax.f32 %v2048_v17, 0.0  ;;  %v2519_v19 = vpop.f32.mrb[63].mxu0  ;;  %v87_v18 = vld [vmem:[%s3234_s3 + $0x7] ss:$0 sm:$0xff] }
0x24b1   :  { %v2054_v21 = vpack.c.bf16 %v2053_v37, %v2053_v37 }
0x24cb   :  { %v1785_v28 = vpop.permute.xlu1 %1784 }
0x24cc   :  { %v1787_v30 = vmul.f32 %v1785_v28, %v1782_v27  ;;  %v49_v27 = vld [vmem:[%s3232_s2 + $0x100] sm:$0xff]  ;;  %v50_v28 = vld [vmem:[%s3232_s2 + $0x110] sm:$0xff] }
0x24ce   :  { %v3097_v5 = vadd.f32 %v1788_v29, %v1787_v30  ;;  %v69_v29 = vpack.c.bf16 %v50_v28, %v49_v27  ;;  %v51_v30 = vld [vmem:[%s3232_s2 + $0x120] sm:$0xff] }
0x24cf   :  { %v1921_v33 = vpop.permute.xlu1 %1920 }
0x24d0   :  { %v1923_v41 = vmul.f32 %v3070_v50, %v1921_v33  ;;  %v1926_v34 = vrot.slane %v3097_v5, 2  ;;  %v53_v33 = vld [vmem:[%s3232_s2 + $0x140] sm:$0xff] }
0x24d2   :  { %v1924_v35 = vadd.f32 %v1923_v41, %v1918_v20  ;;  %v54_v20 = vld [vmem:[%s3232_s2 + $0x150] sm:$0xff] }
0x24d3   :  { %v71_v41 = vpack.c.bf16 %v54_v20, %v53_v33 }
0x24d4   :  { %v1928_v2 = vsel %vm318_vm9, %v1924_v35, %v1926_v34  ;;  %v55_v34 = vld [vmem:[%s3232_s2 + $0x160] sm:$0xff]  ;;  %v56_v35 = vld [vmem:[%s3232_s2 + $0x170] sm:$0xff] }
0x24d5   :  { %v1929_v3 = vpack.c.bf16 %v1928_v2, %v1928_v2  ;;  %v72_v2 = vpack.c.bf16 %v56_v35, %v55_v34 }
0x24d7   :  { %v1931_v38 = vrot.slane %v1929_v3, 3  ;;  %v57_v3 = vld [vmem:[%s3232_s2 + $0x180] sm:$0xff] }
0x24d9   :  { %2511 = vmatmul.mubr.msk.bf16.vlgmr.msra.gmra.mrb[40].mxu1 %vm444_vm10, %v1931_v38  ;;  %v58_v38 = vld [vmem:[%s3232_s2 + $0x190] sm:$0xff] }
0x24da   :  { %2094 = vmatprep.mubr.bf16.mxu1 %v2663_v8  ;;  %2063 = vmatpush1.bf16.msra.mxu1 %v47_v12 }
0x24db   :  { %2167 = vmatprep.subr.bf16.mxu1 %v2663_v8 }
0x25ac   :  { %v1969_v7 = vpop.f32.mrb[40].mxu1 }
0x25ad   :  { %v1970_v39 = vadd.f32 %v2650_v4, %v1969_v7  ;;  %v2512_v40 = vpop.f32.mrb[41].mxu1  ;;  %v40_v4 = vld [vmem:[%s3232_s2 + $0xd8] sm:$0xff]  ;;  %v73_v7 = vpack.c.bf16 %v58_v38, %v57_v3 }
0x25ae   :  { %v1972_v42 = vpop.f32.mrb[42].mxu1  ;;  %v46_v9 = vpack.c.bf16 %v40_v4, %v38_v61  ;;  %v60_v40 = vld [vmem:[%s3232_s2 + $0x1b0] sm:$0xff] }
0x25af   :  { %1986 = vrot.lane.b32.xlu1 %v1970_v39, %s2662_s29  ;;  %1976 = vrot.lane.b32.xlu0 %v1970_v39, %s2659_s19  ;;  %v2513_v43 = vpop.f32.mrb[43].mxu1 }
0x25b0   :  { %2106 = vmatprep.subr.bf16.mxu0 %v46_v9  ;;  %v61_v43 = vld [vmem:[%s3232_s2 + $0x1c0] sm:$0xff] }
0x25b1   :  { %2107 = vmatpush1.bf16.msra.mxu0 %v45_v14 }
0x25b4   :  { %2275 = vmatmul.mubr.msk.bf16.vlgmr.msra.gmra.mrb[64].mxu0 %vm318_vm9, %v2054_v21 }
0x2621   :  { %v1977_v46 = vpop.permute.xlu0 %1976  ;;  %v1987_v53 = vpop.permute.xlu1 %1986 }
0x2622   :  { %v1979_v47 = vadd.f32 %v1977_v46, %v1970_v39  ;;  %v62_v46 = vld [vmem:[%s3232_s2 + $0x1d0] sm:$0xff] }
0x2624   :  { %v2272_v13 = vmul.f32 -1.442695, %v1979_v47  ;;  %v75_v47 = vpack.c.bf16 %v62_v46, %v61_v43 }
0x2626   :  { %2644 = vpow2.f32 %v2272_v13 }
0x2630   :  { %v2645_v48 = vpop.eup %2644 }
0x2631   :  { %v1983_v50 = vadd.f32 1.0, %v2645_v48 }
0x2633   :  { %2646 = vrcp.f32 %v1983_v50 }
0x263d   :  { %v2647_v52 = vpop.eup %2646 }
0x263e   :  { %v1989_v54 = vmul.f32 %v2647_v52, %v1987_v53  ;;  %v1996_v22 = vsub.f32 1.0, %v2647_v52  ;;  %v2002_v45 = vmul.f32 %v2647_v52, %v3097_v5  ;;  %v70_v5 = vpack.c.bf16 %v52_v31, %v51_v30  ;;  %v63_v53 = vld [vmem:[%s3232_s2 + $0x1e0] sm:$0xff] }
0x2640   :  { %1991 = vrot.lane.b32.xlu0 %v1989_v54, %s2661_s1  ;;  %v64_v54 = vld [vmem:[%s3232_s2 + $0x1f0] sm:$0xff] }
0x2641   :  { %v76_v55 = vpack.c.bf16 %v64_v54, %v63_v53 }
0x2687   :  { %v2140_v13 = vpop.f32.mrb[64].mxu0 }
0x2688   :  { %v2142_v48 = vpop.f32.mrb[65].mxu0 }
0x2689   :  { %v2144_v50 = vpop.f32.mrb[66].mxu0 }
0x268a   :  { %v2145_v52 = vpop.f32.mrb[67].mxu0 }
0x26b2   :  { %v1992_v44 = vpop.permute.xlu0 %1991 }
0x26b3   :  { %v1994_v62 = vadd.f32 %v1992_v44, %v1970_v39  ;;  %v59_v39 = vld [vmem:[%s3232_s2 + $0x1a0] sm:$0xff]  ;;  %v78_v44 = vpack.c.bf16 %v68_v51, %v67_v60 }
0x26b4   :  { %v74_v42 = vpack.c.bf16 %v60_v40, %v59_v39 }
0x26b5   :  { %2648 = vtanh.f32 %v1994_v62  ;;  %v2148_v62 = vlaneseq }
0x26b7   :  { %v2149_v63 = vshrl.u32 %v2148_v62, 7 }
0x26b9   :  { %v2150_v1 = vsub.s32 0, %v2149_v63  ;;  %v2154_v61 = vsub.s32 1, %v2149_v63 }
0x26bb   :  { %v2151_v4 = vrot.slane %v2230_v59, %v2150_v1 }
0x26bf   :  { %v2649_v0 = vpop.eup %2648 }
0x26c0   :  { %1998 = vrot.lane.b32.xlu1 %v2649_v0, %s2660_s20 }
0x2732   :  { %v1999_v23 = vpop.permute.xlu1 %1998 }
0x2733   :  { %v2001_v24 = vmul.f32 %v1999_v23, %v1996_v22 }
0x2735   :  { %v2003_v25 = vadd.f32 %v2002_v45, %v2001_v24  ;;  %v2664_v45 = vmov 1983009808  }
0x2736   :  { %v2216_v24 = vunpack.c.l.s4 %v2664_v45 }
0x2737   :  { %v2055_v26 = vpack.c.bf16 %v2003_v25, %v2003_v25 }
0x2738   :  { %v2217_v25 = vunpack.c.0.s8 %v2216_v24 }
0x2739   :  { %2057 = vrot.lane.b32.xlu0 %v2055_v26, %s2660_s20 }
0x273a   :  { %v2220_v26 = vsub.s32 %v2217_v25, %v2149_v63 }
0x27ab   :  { %v2058_v32 = vpop.permute.xlu0 %2057 }
0x27ac   :  { %2274 = vmatmul.mubr.msk.bf16.vlgmr.msra.gmra.mrb[44].mxu1 %vm318_vm9, %v2058_v32 }
0x27ad   :  { %2168 = vmatpush1.bf16.msra.mxu1 %v69_v29 }
0x27ae   :  { %2169 = vmatprep.subr.bf16.mxu1 %v2663_v8 }
0x27b1   :  { %2170 = vmatpush1.bf16.msra.mxu1 %v70_v5 }
0x27b2   :  { %2171 = vmatprep.subr.bf16.mxu1 %v2663_v8 }
0x27b5   :  { %2172 = vmatpush1.bf16.msra.mxu1 %v71_v41 }
0x27b6   :  { %2173 = vmatprep.subr.bf16.mxu1 %v2663_v8 }
0x27b9   :  { %2174 = vmatpush1.bf16.msra.mxu1 %v72_v2 }
0x27ba   :  { %2175 = vmatprep.subr.bf16.mxu1 %v2663_v8 }
0x27bd   :  { %2176 = vmatpush1.bf16.msra.mxu1 %v73_v7 }
0x27be   :  { %2177 = vmatprep.subr.bf16.mxu1 %v2663_v8 }
0x27c1   :  { %2178 = vmatpush1.bf16.msra.mxu1 %v74_v42 }
0x27c2   :  { %2179 = vmatprep.subr.bf16.mxu1 %v2663_v8 }
0x27c5   :  { %2180 = vmatpush1.bf16.msra.mxu1 %v75_v47 }
0x27c6   :  { %2181 = vmatprep.subr.bf16.mxu1 %v2663_v8 }
0x27c9   :  { %2182 = vmatpush1.bf16.msra.mxu1 %v76_v55 }
0x27ca   :  { %2183 = vmatprep.subr.bf16.mxu1 %v2663_v8 }
0x27cd   :  { %2184 = vmatpush1.bf16.msra.mxu1 %v77_v58 }
0x27ce   :  { %2185 = vmatprep.subr.bf16.mxu1 %v2663_v8  ;;  %v2155_v8 = vrot.slane %v2230_v59, %v2154_v61 }
0x27d1   :  { %2186 = vmatpush1.bf16.msra.mxu1 %v78_v44 }
0x287f   :  { %v2096_v6 = vpop.f32.mrb[44].mxu1 }
0x2880   :  { %v2141_v9 = vadd.f32 %v2140_v13, %v2096_v6  ;;  %v2098_v49 = vpop.f32.mrb[45].mxu1 }
0x2881   :  { %v2143_v10 = vadd.f32 %v2142_v48, %v2098_v49  ;;  %v2100_v11 = vpop.f32.mrb[46].mxu1 }
0x2882   :  { %v2158_v12 = vadd.f32 %v2151_v4, %v2141_v9  ;;  %v2101_v14 = vpop.f32.mrb[47].mxu1 }
0x2883   :  { %v2159_v0 = vadd.f32 %v2155_v8, %v2143_v10 }
0x2884   :  { %v2160_v15 = vmax.f32 %v2158_v12, 0.0 }
0x2885   :  { %v2161_v16 = vmax.f32 %v2159_v0, 0.0 }
0x2886   :  { %v2162_v36 = vpack.c.bf16 %v2160_v15, %v2160_v15 }
0x2887   :  { %v2163_v17 = vpack.c.bf16 %v2161_v16, %v2161_v16 }
0x2889   :  { %2276 = vmatprep.mubr.msk.bf16.mxu1 %vm444_vm10, %v2163_v17 }
0x288a   :  { %2200 = vmatmul.mubr.bf16.vlgmr.msra.gmra.mrb[48].mxu1 %v2162_v36 }
0x295d   :  { %v2201_v37 = vpop.f32.mrb[48].mxu1 }
0x295e   :  { %v2202_v19 = vadd.f32 %v2201_v37, %v87_v18  ;;  %v2203_v21 = vpop.f32.mrb[49].mxu1 }
0x295f   :  { %v2204_v22 = vpop.f32.mrb[50].mxu1 }
0x2960   :  { %v2205_v23 = vpop.f32.mrb[51].mxu1  ;;  %2208 = vrot.lane.b32.xlu1 %v2202_v19, %s2661_s1 }
0x29d2   :  { %v2209_v27 = vpop.permute.xlu1 %2208 }
0x29d3   :  { %v2211_v28 = vsel %vm444_vm10, %v2161_v16, %v2209_v27 }
0x29d4   :  { %v2214_v29 = vcombine.low %v2160_v15, %v2211_v28 }
0x29d6   :  { %v2221_v30 = vrot.slane %v2214_v29, %v2220_v26 }
0x29d8   :  { %2225 = vst.msk [vmem:[%s3236_s4] sm:$0xf] %vm2224_vm14, %v2221_v30 }

</bundles_post_ra>
